<compile_context>
chip_gen: v7x
topology: tpu7x:2x2x1
jax: 0.10.0
libtpu: 0.0.40
codegen_flags: <defaults>
</compile_context>

<pallas_src>
import math
import jax
import jax.numpy as jnp
from jax.experimental import pallas as pl
from jax.experimental.pallas import tpu as pltpu

# ---- miniature BERT config (synthetic; AutoModel.from_pretrained not loadable) ----
VOCAB = 128
HIDDEN = 32
N_HEADS = 2
HEAD_DIM = HIDDEN // N_HEADS
N_LAYERS = 2
FFN = 64
MAX_POS = 16
TYPE_VOCAB = 2
LN_EPS = 1e-12
ATTN_SCALE = 1.0 / math.sqrt(HEAD_DIM)


def _layernorm(y, gamma, beta):
    mu = jnp.mean(y, axis=-1, keepdims=True)
    var = jnp.mean((y - mu) ** 2, axis=-1, keepdims=True)
    return (y - mu) * jax.lax.rsqrt(var + LN_EPS) * gamma + beta


# ------------------------- parameters -------------------------

def init_params(key):
    keys = iter(jax.random.split(key, 8 + N_LAYERS * 16))

    def w(shape):
        return jax.random.normal(next(keys), shape, jnp.float32) * 0.02

    params = {
        "word_emb": w((VOCAB, HIDDEN)),
        "pos_emb": w((MAX_POS, HIDDEN)),
        "type_emb": w((TYPE_VOCAB, HIDDEN)),
        "emb_ln_g": jnp.ones((HIDDEN,), jnp.float32),
        "emb_ln_b": jnp.zeros((HIDDEN,), jnp.float32),
        "layers": [],
    }
    for _ in range(N_LAYERS):
        params["layers"].append({
            "wq": w((HIDDEN, HIDDEN)), "bq": jnp.zeros((HIDDEN,), jnp.float32),
            "wk": w((HIDDEN, HIDDEN)), "bk": jnp.zeros((HIDDEN,), jnp.float32),
            "wv": w((HIDDEN, HIDDEN)), "bv": jnp.zeros((HIDDEN,), jnp.float32),
            "wo": w((HIDDEN, HIDDEN)), "bo": jnp.zeros((HIDDEN,), jnp.float32),
            "ln1_g": jnp.ones((HIDDEN,), jnp.float32),
            "ln1_b": jnp.zeros((HIDDEN,), jnp.float32),
            "w1": w((HIDDEN, FFN)), "b1": jnp.zeros((FFN,), jnp.float32),
            "w2": w((FFN, HIDDEN)), "b2": jnp.zeros((HIDDEN,), jnp.float32),
            "ln2_g": jnp.ones((HIDDEN,), jnp.float32),
            "ln2_b": jnp.zeros((HIDDEN,), jnp.float32),
        })
    return params


# ------------------------- fused forward -------------------------

def bert_cls_embedding(params, input_ids, attention_mask, token_type_ids):
    """Equivalent of Embedding.forward(encoded_dict): BERT -> last_hidden_state[:, 0, :]."""
    B, S = input_ids.shape
    if S > MAX_POS:
        raise ValueError(f"sequence length {S} exceeds MAX_POS={MAX_POS}")
    M = B * S
    layers = params["layers"]

    # TODO(synk): token ids >= VOCAB (or < 0) map to a zero embedding instead of
    # raising like nn.Embedding; inputs are assumed in-range here.
    ids = input_ids.reshape(M, 1).astype(jnp.int32)
    tids = token_type_ids.reshape(M, 1).astype(jnp.int32)
    mask = attention_mask.astype(jnp.float32).reshape(B, S)

    word_emb = params["word_emb"]
    # position embeddings pre-tiled to the full (M, H) slab (layout plumbing, once)
    pos_tiled = jnp.tile(params["pos_emb"][:S], (B, 1))               # (M, H)
    type0 = params["type_emb"][0:1]                                    # (1, H)
    type1 = params["type_emb"][1:2]                                    # (1, H)
    emb_g = params["emb_ln_g"].reshape(1, HIDDEN)
    emb_b = params["emb_ln_b"].reshape(1, HIDDEN)

    # fused QKV weights: one (H, 3H) matmul per layer; head h of Q/K/V lives at
    # columns [h*HD:(h+1)*HD], [H + h*HD: ...], [2H + h*HD: ...]
    wqkv = jnp.stack([jnp.concatenate([l["wq"], l["wk"], l["wv"]], axis=1)
                      for l in layers])                                # (L, H, 3H)
    bqkv = jnp.stack([jnp.concatenate([l["bq"], l["bk"], l["bv"]]).reshape(1, 3 * HIDDEN)
                      for l in layers])                                # (L, 1, 3H)
    wo = jnp.stack([l["wo"] for l in layers])                          # (L, H, H)
    bo = jnp.stack([l["bo"].reshape(1, HIDDEN) for l in layers])
    ln1g = jnp.stack([l["ln1_g"].reshape(1, HIDDEN) for l in layers])
    ln1b = jnp.stack([l["ln1_b"].reshape(1, HIDDEN) for l in layers])
    w1 = jnp.stack([l["w1"] for l in layers])                          # (L, H, FFN)
    fb1 = jnp.stack([l["b1"].reshape(1, FFN) for l in layers])
    w2 = jnp.stack([l["w2"] for l in layers])                          # (L, FFN, H)
    fb2 = jnp.stack([l["b2"].reshape(1, HIDDEN) for l in layers])
    ln2g = jnp.stack([l["ln2_g"].reshape(1, HIDDEN) for l in layers])
    ln2b = jnp.stack([l["ln2_b"].reshape(1, HIDDEN) for l in layers])

    def kernel(ids_ref, tids_ref, mask_ref,
               wemb_ref, pemb_ref, t0_ref, t1_ref, eg_ref, eb_ref,
               wqkv_ref, bqkv_ref, wo_ref, bo_ref, g1_ref, be1_ref,
               w1_ref, fb1_ref, w2_ref, fb2_ref, g2_ref, be2_ref,
               o_ref):
        # ---- embeddings: word one-hot matmul + type select + tiled pos add, one slab LN ----
        onehot = (jax.lax.broadcasted_iota(jnp.int32, (M, VOCAB), 1)
                  == ids_ref[...]).astype(jnp.float32)
        we = jnp.dot(onehot, wemb_ref[...], preferred_element_type=jnp.float32)   # (M, H)
        # TODO(synk): two-way select assumes TYPE_VOCAB == 2 (true for BERT).
        te = jnp.where(tids_ref[...] == 0, t0_ref[...], t1_ref[...])              # (M, H)
        h = _layernorm(we + te + pemb_ref[...], eg_ref[...], eb_ref[...])         # (M, H)

        # attention-mask bias, computed once per forward
        bias = (1.0 - mask_ref[...]) * -1e9                                        # (B, S)

        # ---- encoder layers, fully unrolled; hidden state stays in vregs ----
        for l in range(N_LAYERS):
            # fused Q/K/V projection over the full slab: one (M,32)@(32,96) matmul
            qkv = jnp.dot(h, wqkv_ref[l],
                          preferred_element_type=jnp.float32) + bqkv_ref[l]        # (M, 3H)

            ctx_rows = []
            for b in range(B):
                r0 = b * S
                bias_b = bias[b:b + 1, :]                                          # (1, S)
                head_ctx = []
                for hd in range(N_HEADS):
                    c0 = hd * HEAD_DIM
                    q = qkv[r0:r0 + S, c0:c0 + HEAD_DIM]                           # (S, HD)
                    k = qkv[r0:r0 + S, HIDDEN + c0:HIDDEN + c0 + HEAD_DIM]
                    v = qkv[r0:r0 + S, 2 * HIDDEN + c0:2 * HIDDEN + c0 + HEAD_DIM]
                    s = jax.lax.dot_general(
                        q, k, (((1,), (1,)), ((), ())),
                        preferred_element_type=jnp.float32) * ATTN_SCALE + bias_b  # (S, S)
                    s = s - jnp.max(s, axis=-1, keepdims=True)
                    p = jnp.exp(s)
                    p = p * pl.reciprocal(jnp.sum(p, axis=-1, keepdims=True),
                                          approx=True)
                    head_ctx.append(jnp.dot(p, v,
                                            preferred_element_type=jnp.float32))   # (S, HD)
                ctx_rows.append(jnp.concatenate(head_ctx, axis=-1))                # (S, H)
            ctx = jnp.concatenate(ctx_rows, axis=0)                                # (M, H)

            # fused output projection + residual LN over the full slab
            attn = jnp.dot(ctx, wo_ref[l],
                           preferred_element_type=jnp.float32) + bo_ref[l]
            h = _layernorm(attn + h, g1_ref[l], be1_ref[l])

            # feed-forward + residual LN over the full slab
            ff = jnp.dot(h, w1_ref[l], preferred_element_type=jnp.float32) + fb1_ref[l]
            # TODO(synk): HF BERT uses exact (erf) GELU; tanh approximation used here.
            ff = jax.nn.gelu(ff, approximate=True)
            ff2 = jnp.dot(ff, w2_ref[l], preferred_element_type=jnp.float32) + fb2_ref[l]
            h = _layernorm(ff2 + h, g2_ref[l], be2_ref[l])

        # ---- CLS token (row 0 of each sequence): direct row writes ----
        for b in range(B):
            o_ref[b:b + 1, :] = h[b * S:b * S + 1, :]

    args = (ids, tids, mask, word_emb, pos_tiled, type0, type1, emb_g, emb_b,
            wqkv, bqkv, wo, bo, ln1g, ln1b, w1, fb1, w2, fb2, ln2g, ln2b)

    # advisory cost hint for the XLA scheduler
    flops = (2 * M * VOCAB * HIDDEN
             + N_LAYERS * (2 * M * HIDDEN * 3 * HIDDEN            # fused QKV
                           + 4 * B * N_HEADS * S * S * HEAD_DIM    # QK^T + PV
                           + 2 * M * HIDDEN * HIDDEN               # out-proj
                           + 4 * M * HIDDEN * FFN))                # FFN
    transcendentals = N_LAYERS * (B * N_HEADS * S * S + M * FFN) + 3 * M * (2 * N_LAYERS + 1)
    bytes_accessed = sum(int(a.size) * a.dtype.itemsize for a in args) + B * HIDDEN * 4

    vmem_spec = pl.BlockSpec(memory_space=pltpu.MemorySpace.VMEM)

    return pl.pallas_call(
        kernel,
        out_shape=jax.ShapeDtypeStruct((B, HIDDEN), jnp.float32),
        in_specs=[vmem_spec] * len(args),
        out_specs=vmem_spec,
        cost_estimate=pl.CostEstimate(flops=flops,
                                      transcendentals=transcendentals,
                                      bytes_accessed=bytes_accessed),
    )(*args)


if __name__ == "__main__":
    B, S = 2, 8
    key = jax.random.PRNGKey(0)
    k_ids, k_params = jax.random.split(key)

    input_ids = jax.random.randint(k_ids, (B, S), 0, VOCAB, dtype=jnp.int32)
    attention_mask = jnp.ones((B, S), jnp.float32)
    token_type_ids = jnp.zeros((B, S), jnp.int32)

    params = init_params(k_params)

    out = bert_cls_embedding(params, input_ids, attention_mask, token_type_ids)
    out = jax.block_until_ready(out)
    assert out.shape == (B, HIDDEN) and out.dtype == jnp.float32
    print("KERNEL_OK")
</pallas_src>

<mosaic_0001>
module attributes {stable_mosaic.version = 11 : i64} {
  func.func @kernel(%arg0: memref<16x1xi32, #tpu.memory_space<vmem>>, %arg1: memref<16x1xi32, #tpu.memory_space<vmem>>, %arg2: memref<2x8xf32, #tpu.memory_space<vmem>>, %arg3: memref<128x32xf32, #tpu.memory_space<vmem>>, %arg4: memref<16x32xf32, #tpu.memory_space<vmem>>, %arg5: memref<1x32xf32, #tpu.memory_space<vmem>>, %arg6: memref<1x32xf32, #tpu.memory_space<vmem>>, %arg7: memref<1x32xf32, #tpu.memory_space<vmem>>, %arg8: memref<1x32xf32, #tpu.memory_space<vmem>>, %arg9: memref<2x32x96xf32, #tpu.memory_space<vmem>>, %arg10: memref<2x1x96xf32, #tpu.memory_space<vmem>>, %arg11: memref<2x32x32xf32, #tpu.memory_space<vmem>>, %arg12: memref<2x1x32xf32, #tpu.memory_space<vmem>>, %arg13: memref<2x1x32xf32, #tpu.memory_space<vmem>>, %arg14: memref<2x1x32xf32, #tpu.memory_space<vmem>>, %arg15: memref<2x32x64xf32, #tpu.memory_space<vmem>>, %arg16: memref<2x1x64xf32, #tpu.memory_space<vmem>>, %arg17: memref<2x64x32xf32, #tpu.memory_space<vmem>>, %arg18: memref<2x1x32xf32, #tpu.memory_space<vmem>>, %arg19: memref<2x1x32xf32, #tpu.memory_space<vmem>>, %arg20: memref<2x1x32xf32, #tpu.memory_space<vmem>>, %arg21: memref<2x32xf32, #tpu.memory_space<vmem>>) attributes {dimension_semantics = [], scalar_prefetch = 0 : i64, scratch_operands = 0 : i64, tpu.core_type = #tpu.core_type<tc>} {
    %0 = tpu.iota {dimensions = array<i32: 1>} : vector<16x128xi32>
    %c0 = arith.constant 0 : index
    %c0_0 = arith.constant 0 : index
    %1 = vector.load %arg0[%c0, %c0_0] : memref<16x1xi32, #tpu.memory_space<vmem>>, vector<16x1xi32>
    %2 = vector.broadcast %1 : vector<16x1xi32> to vector<16x128xi32>
    %3 = arith.cmpi eq, %0, %2 : vector<16x128xi32>
    %4 = arith.extui %3 : vector<16x128xi1> to vector<16x128xi32>
    %5 = arith.sitofp %4 : vector<16x128xi32> to vector<16x128xf32>
    %c0_1 = arith.constant 0 : index
    %c0_2 = arith.constant 0 : index
    %6 = vector.load %arg3[%c0_1, %c0_2] : memref<128x32xf32, #tpu.memory_space<vmem>>, vector<128x32xf32>
    %cst = arith.constant dense<0.000000e+00> : vector<16x32xf32>
    %7 = tpu.matmul %5, %6, %cst {dimension_numbers = #tpu.dot_dimension_numbers<[1], [0], [0], [1], [0, 0, 1, 1], [], []>} : vector<16x128xf32>, vector<128x32xf32>, vector<16x32xf32> -> vector<16x32xf32>
    %c0_3 = arith.constant 0 : index
    %c0_4 = arith.constant 0 : index
    %8 = vector.load %arg1[%c0_3, %c0_4] : memref<16x1xi32, #tpu.memory_space<vmem>>, vector<16x1xi32>
    %c0_i32 = arith.constant 0 : i32
    %9 = vector.broadcast %c0_i32 : i32 to vector<16x1xi32>
    %10 = arith.cmpi eq, %8, %9 : vector<16x1xi32>
    %c0_5 = arith.constant 0 : index
    %c0_6 = arith.constant 0 : index
    %11 = vector.load %arg5[%c0_5, %c0_6] : memref<1x32xf32, #tpu.memory_space<vmem>>, vector<1x32xf32>
    %c0_7 = arith.constant 0 : index
    %c0_8 = arith.constant 0 : index
    %12 = vector.load %arg6[%c0_7, %c0_8] : memref<1x32xf32, #tpu.memory_space<vmem>>, vector<1x32xf32>
    %13 = vector.shape_cast %10 : vector<16x1xi1> to vector<16x1xi1>
    %14 = vector.broadcast %13 : vector<16x1xi1> to vector<16x32xi1>
    %15 = vector.shape_cast %11 : vector<1x32xf32> to vector<1x32xf32>
    %16 = vector.broadcast %15 : vector<1x32xf32> to vector<16x32xf32>
    %17 = vector.shape_cast %12 : vector<1x32xf32> to vector<1x32xf32>
    %18 = vector.broadcast %17 : vector<1x32xf32> to vector<16x32xf32>
    %19 = arith.select %14, %16, %18 : vector<16x32xi1>, vector<16x32xf32>
    %20 = arith.addf %7, %19 : vector<16x32xf32>
    %c0_9 = arith.constant 0 : index
    %c0_10 = arith.constant 0 : index
    %21 = vector.load %arg4[%c0_9, %c0_10] : memref<16x32xf32, #tpu.memory_space<vmem>>, vector<16x32xf32>
    %22 = arith.addf %20, %21 : vector<16x32xf32>
    %c0_11 = arith.constant 0 : index
    %c0_12 = arith.constant 0 : index
    %23 = vector.load %arg7[%c0_11, %c0_12] : memref<1x32xf32, #tpu.memory_space<vmem>>, vector<1x32xf32>
    %c0_13 = arith.constant 0 : index
    %c0_14 = arith.constant 0 : index
    %24 = vector.load %arg8[%c0_13, %c0_14] : memref<1x32xf32, #tpu.memory_space<vmem>>, vector<1x32xf32>
    %cst_15 = arith.constant dense<0.000000e+00> : vector<16xf32>
    %25 = vector.multi_reduction <add>, %22, %cst_15 [1] : vector<16x32xf32> to vector<16xf32>
    %26 = vector.shape_cast %25 : vector<16xf32> to vector<16x1xf32>
    %cst_16 = arith.constant 3.200000e+01 : f32
    %27 = vector.broadcast %cst_16 : f32 to vector<16x1xf32>
    %28 = arith.divf %26, %27 : vector<16x1xf32>
    %29 = vector.broadcast %28 : vector<16x1xf32> to vector<16x32xf32>
    %30 = arith.subf %22, %29 : vector<16x32xf32>
    %31 = arith.mulf %30, %30 : vector<16x32xf32>
    %cst_17 = arith.constant dense<0.000000e+00> : vector<16xf32>
    %32 = vector.multi_reduction <add>, %31, %cst_17 [1] : vector<16x32xf32> to vector<16xf32>
    %33 = vector.shape_cast %32 : vector<16xf32> to vector<16x1xf32>
    %cst_18 = arith.constant 3.200000e+01 : f32
    %34 = vector.broadcast %cst_18 : f32 to vector<16x1xf32>
    %35 = arith.divf %33, %34 : vector<16x1xf32>
    %36 = vector.broadcast %28 : vector<16x1xf32> to vector<16x32xf32>
    %37 = arith.subf %22, %36 : vector<16x32xf32>
    %cst_19 = arith.constant 9.99999996E-13 : f32
    %38 = vector.broadcast %cst_19 : f32 to vector<16x1xf32>
    %39 = arith.addf %35, %38 : vector<16x1xf32>
    %40 = math.rsqrt %39 : vector<16x1xf32>
    %41 = vector.broadcast %40 : vector<16x1xf32> to vector<16x32xf32>
    %42 = arith.mulf %37, %41 : vector<16x32xf32>
    %43 = vector.broadcast %23 : vector<1x32xf32> to vector<16x32xf32>
    %44 = arith.mulf %42, %43 : vector<16x32xf32>
    %45 = vector.broadcast %24 : vector<1x32xf32> to vector<16x32xf32>
    %46 = arith.addf %44, %45 : vector<16x32xf32>
    %c0_20 = arith.constant 0 : index
    %c0_21 = arith.constant 0 : index
    %47 = vector.load %arg2[%c0_20, %c0_21] : memref<2x8xf32, #tpu.memory_space<vmem>>, vector<2x8xf32>
    %cst_22 = arith.constant 1.000000e+00 : f32
    %48 = vector.broadcast %cst_22 : f32 to vector<2x8xf32>
    %49 = arith.subf %48, %47 : vector<2x8xf32>
    %cst_23 = arith.constant -1.000000e+09 : f32
    %50 = vector.broadcast %cst_23 : f32 to vector<2x8xf32>
    %51 = arith.mulf %49, %50 : vector<2x8xf32>
    %c0_24 = arith.constant 0 : index
    %c0_25 = arith.constant 0 : index
    %c0_26 = arith.constant 0 : index
    %52 = vector.load %arg9[%c0_24, %c0_25, %c0_26] : memref<2x32x96xf32, #tpu.memory_space<vmem>>, vector<1x32x96xf32>
    %53 = vector.shape_cast %52 : vector<1x32x96xf32> to vector<32x96xf32>
    %cst_27 = arith.constant dense<0.000000e+00> : vector<16x96xf32>
    %54 = tpu.matmul %46, %53, %cst_27 {dimension_numbers = #tpu.dot_dimension_numbers<[1], [0], [0], [1], [0, 0, 1, 1], [], []>} : vector<16x32xf32>, vector<32x96xf32>, vector<16x96xf32> -> vector<16x96xf32>
    %c0_28 = arith.constant 0 : index
    %c0_29 = arith.constant 0 : index
    %c0_30 = arith.constant 0 : index
    %55 = vector.load %arg10[%c0_28, %c0_29, %c0_30] : memref<2x1x96xf32, #tpu.memory_space<vmem>>, vector<1x1x96xf32>
    %56 = vector.shape_cast %55 : vector<1x1x96xf32> to vector<1x96xf32>
    %57 = vector.broadcast %56 : vector<1x96xf32> to vector<16x96xf32>
    %58 = arith.addf %54, %57 : vector<16x96xf32>
    %59 = vector.extract_strided_slice %51 {offsets = [0, 0], sizes = [1, 8], strides = [1, 1]} : vector<2x8xf32> to vector<1x8xf32>
    %60 = vector.extract_strided_slice %58 {offsets = [0, 0], sizes = [8, 16], strides = [1, 1]} : vector<16x96xf32> to vector<8x16xf32>
    %61 = vector.extract_strided_slice %58 {offsets = [0, 32], sizes = [8, 16], strides = [1, 1]} : vector<16x96xf32> to vector<8x16xf32>
    %62 = vector.extract_strided_slice %58 {offsets = [0, 64], sizes = [8, 16], strides = [1, 1]} : vector<16x96xf32> to vector<8x16xf32>
    %cst_31 = arith.constant dense<0.000000e+00> : vector<8x8xf32>
    %63 = tpu.matmul %60, %61, %cst_31 {dimension_numbers = #tpu.dot_dimension_numbers<[1], [1], [0], [0], [0, 0, 1, 0], [], []>} : vector<8x16xf32>, vector<8x16xf32>, vector<8x8xf32> -> vector<8x8xf32>
    %cst_32 = arith.constant 2.500000e-01 : f32
    %64 = vector.broadcast %cst_32 : f32 to vector<8x8xf32>
    %65 = arith.mulf %63, %64 : vector<8x8xf32>
    %66 = vector.broadcast %59 : vector<1x8xf32> to vector<8x8xf32>
    %67 = arith.addf %65, %66 : vector<8x8xf32>
    %cst_33 = arith.constant dense<0xFF800000> : vector<8xf32>
    %68 = vector.multi_reduction <maximumf>, %67, %cst_33 [1] : vector<8x8xf32> to vector<8xf32>
    %69 = vector.shape_cast %68 : vector<8xf32> to vector<8x1xf32>
    %70 = vector.broadcast %69 : vector<8x1xf32> to vector<8x8xf32>
    %71 = arith.subf %67, %70 : vector<8x8xf32>
    %72 = math.exp %71 : vector<8x8xf32>
    %cst_34 = arith.constant dense<0.000000e+00> : vector<8xf32>
    %73 = vector.multi_reduction <add>, %72, %cst_34 [1] : vector<8x8xf32> to vector<8xf32>
    %74 = vector.shape_cast %73 : vector<8xf32> to vector<8x1xf32>
    %75 = tpu.reciprocal %74 {approx = true} : vector<8x1xf32> -> vector<8x1xf32>
    %76 = vector.broadcast %75 : vector<8x1xf32> to vector<8x8xf32>
    %77 = arith.mulf %72, %76 : vector<8x8xf32>
    %cst_35 = arith.constant dense<0.000000e+00> : vector<8x16xf32>
    %78 = tpu.matmul %77, %62, %cst_35 {dimension_numbers = #tpu.dot_dimension_numbers<[1], [0], [0], [1], [0, 0, 1, 1], [], []>} : vector<8x8xf32>, vector<8x16xf32>, vector<8x16xf32> -> vector<8x16xf32>
    %79 = vector.extract_strided_slice %58 {offsets = [0, 16], sizes = [8, 16], strides = [1, 1]} : vector<16x96xf32> to vector<8x16xf32>
    %80 = vector.extract_strided_slice %58 {offsets = [0, 48], sizes = [8, 16], strides = [1, 1]} : vector<16x96xf32> to vector<8x16xf32>
    %81 = vector.extract_strided_slice %58 {offsets = [0, 80], sizes = [8, 16], strides = [1, 1]} : vector<16x96xf32> to vector<8x16xf32>
    %cst_36 = arith.constant dense<0.000000e+00> : vector<8x8xf32>
    %82 = tpu.matmul %79, %80, %cst_36 {dimension_numbers = #tpu.dot_dimension_numbers<[1], [1], [0], [0], [0, 0, 1, 0], [], []>} : vector<8x16xf32>, vector<8x16xf32>, vector<8x8xf32> -> vector<8x8xf32>
    %cst_37 = arith.constant 2.500000e-01 : f32
    %83 = vector.broadcast %cst_37 : f32 to vector<8x8xf32>
    %84 = arith.mulf %82, %83 : vector<8x8xf32>
    %85 = vector.broadcast %59 : vector<1x8xf32> to vector<8x8xf32>
    %86 = arith.addf %84, %85 : vector<8x8xf32>
    %cst_38 = arith.constant dense<0xFF800000> : vector<8xf32>
    %87 = vector.multi_reduction <maximumf>, %86, %cst_38 [1] : vector<8x8xf32> to vector<8xf32>
    %88 = vector.shape_cast %87 : vector<8xf32> to vector<8x1xf32>
    %89 = vector.broadcast %88 : vector<8x1xf32> to vector<8x8xf32>
    %90 = arith.subf %86, %89 : vector<8x8xf32>
    %91 = math.exp %90 : vector<8x8xf32>
    %cst_39 = arith.constant dense<0.000000e+00> : vector<8xf32>
    %92 = vector.multi_reduction <add>, %91, %cst_39 [1] : vector<8x8xf32> to vector<8xf32>
    %93 = vector.shape_cast %92 : vector<8xf32> to vector<8x1xf32>
    %94 = tpu.reciprocal %93 {approx = true} : vector<8x1xf32> -> vector<8x1xf32>
    %95 = vector.broadcast %94 : vector<8x1xf32> to vector<8x8xf32>
    %96 = arith.mulf %91, %95 : vector<8x8xf32>
    %cst_40 = arith.constant dense<0.000000e+00> : vector<8x16xf32>
    %97 = tpu.matmul %96, %81, %cst_40 {dimension_numbers = #tpu.dot_dimension_numbers<[1], [0], [0], [1], [0, 0, 1, 1], [], []>} : vector<8x8xf32>, vector<8x16xf32>, vector<8x16xf32> -> vector<8x16xf32>
    %98 = tpu.concatenate %78, %97 in 1 : vector<8x16xf32>, vector<8x16xf32> -> vector<8x32xf32>
    %99 = vector.extract_strided_slice %51 {offsets = [1, 0], sizes = [1, 8], strides = [1, 1]} : vector<2x8xf32> to vector<1x8xf32>
    %100 = vector.extract_strided_slice %58 {offsets = [8, 0], sizes = [8, 16], strides = [1, 1]} : vector<16x96xf32> to vector<8x16xf32>
    %101 = vector.extract_strided_slice %58 {offsets = [8, 32], sizes = [8, 16], strides = [1, 1]} : vector<16x96xf32> to vector<8x16xf32>
    %102 = vector.extract_strided_slice %58 {offsets = [8, 64], sizes = [8, 16], strides = [1, 1]} : vector<16x96xf32> to vector<8x16xf32>
    %cst_41 = arith.constant dense<0.000000e+00> : vector<8x8xf32>
    %103 = tpu.matmul %100, %101, %cst_41 {dimension_numbers = #tpu.dot_dimension_numbers<[1], [1], [0], [0], [0, 0, 1, 0], [], []>} : vector<8x16xf32>, vector<8x16xf32>, vector<8x8xf32> -> vector<8x8xf32>
    %cst_42 = arith.constant 2.500000e-01 : f32
    %104 = vector.broadcast %cst_42 : f32 to vector<8x8xf32>
    %105 = arith.mulf %103, %104 : vector<8x8xf32>
    %106 = vector.broadcast %99 : vector<1x8xf32> to vector<8x8xf32>
    %107 = arith.addf %105, %106 : vector<8x8xf32>
    %cst_43 = arith.constant dense<0xFF800000> : vector<8xf32>
    %108 = vector.multi_reduction <maximumf>, %107, %cst_43 [1] : vector<8x8xf32> to vector<8xf32>
    %109 = vector.shape_cast %108 : vector<8xf32> to vector<8x1xf32>
    %110 = vector.broadcast %109 : vector<8x1xf32> to vector<8x8xf32>
    %111 = arith.subf %107, %110 : vector<8x8xf32>
    %112 = math.exp %111 : vector<8x8xf32>
    %cst_44 = arith.constant dense<0.000000e+00> : vector<8xf32>
    %113 = vector.multi_reduction <add>, %112, %cst_44 [1] : vector<8x8xf32> to vector<8xf32>
    %114 = vector.shape_cast %113 : vector<8xf32> to vector<8x1xf32>
    %115 = tpu.reciprocal %114 {approx = true} : vector<8x1xf32> -> vector<8x1xf32>
    %116 = vector.broadcast %115 : vector<8x1xf32> to vector<8x8xf32>
    %117 = arith.mulf %112, %116 : vector<8x8xf32>
    %cst_45 = arith.constant dense<0.000000e+00> : vector<8x16xf32>
    %118 = tpu.matmul %117, %102, %cst_45 {dimension_numbers = #tpu.dot_dimension_numbers<[1], [0], [0], [1], [0, 0, 1, 1], [], []>} : vector<8x8xf32>, vector<8x16xf32>, vector<8x16xf32> -> vector<8x16xf32>
    %119 = vector.extract_strided_slice %58 {offsets = [8, 16], sizes = [8, 16], strides = [1, 1]} : vector<16x96xf32> to vector<8x16xf32>
    %120 = vector.extract_strided_slice %58 {offsets = [8, 48], sizes = [8, 16], strides = [1, 1]} : vector<16x96xf32> to vector<8x16xf32>
    %121 = vector.extract_strided_slice %58 {offsets = [8, 80], sizes = [8, 16], strides = [1, 1]} : vector<16x96xf32> to vector<8x16xf32>
    %cst_46 = arith.constant dense<0.000000e+00> : vector<8x8xf32>
    %122 = tpu.matmul %119, %120, %cst_46 {dimension_numbers = #tpu.dot_dimension_numbers<[1], [1], [0], [0], [0, 0, 1, 0], [], []>} : vector<8x16xf32>, vector<8x16xf32>, vector<8x8xf32> -> vector<8x8xf32>
    %cst_47 = arith.constant 2.500000e-01 : f32
    %123 = vector.broadcast %cst_47 : f32 to vector<8x8xf32>
    %124 = arith.mulf %122, %123 : vector<8x8xf32>
    %125 = vector.broadcast %99 : vector<1x8xf32> to vector<8x8xf32>
    %126 = arith.addf %124, %125 : vector<8x8xf32>
    %cst_48 = arith.constant dense<0xFF800000> : vector<8xf32>
    %127 = vector.multi_reduction <maximumf>, %126, %cst_48 [1] : vector<8x8xf32> to vector<8xf32>
    %128 = vector.shape_cast %127 : vector<8xf32> to vector<8x1xf32>
    %129 = vector.broadcast %128 : vector<8x1xf32> to vector<8x8xf32>
    %130 = arith.subf %126, %129 : vector<8x8xf32>
    %131 = math.exp %130 : vector<8x8xf32>
    %cst_49 = arith.constant dense<0.000000e+00> : vector<8xf32>
    %132 = vector.multi_reduction <add>, %131, %cst_49 [1] : vector<8x8xf32> to vector<8xf32>
    %133 = vector.shape_cast %132 : vector<8xf32> to vector<8x1xf32>
    %134 = tpu.reciprocal %133 {approx = true} : vector<8x1xf32> -> vector<8x1xf32>
    %135 = vector.broadcast %134 : vector<8x1xf32> to vector<8x8xf32>
    %136 = arith.mulf %131, %135 : vector<8x8xf32>
    %cst_50 = arith.constant dense<0.000000e+00> : vector<8x16xf32>
    %137 = tpu.matmul %136, %121, %cst_50 {dimension_numbers = #tpu.dot_dimension_numbers<[1], [0], [0], [1], [0, 0, 1, 1], [], []>} : vector<8x8xf32>, vector<8x16xf32>, vector<8x16xf32> -> vector<8x16xf32>
    %138 = tpu.concatenate %118, %137 in 1 : vector<8x16xf32>, vector<8x16xf32> -> vector<8x32xf32>
    %139 = tpu.concatenate %98, %138 in 0 : vector<8x32xf32>, vector<8x32xf32> -> vector<16x32xf32>
    %c0_51 = arith.constant 0 : index
    %c0_52 = arith.constant 0 : index
    %c0_53 = arith.constant 0 : index
    %140 = vector.load %arg11[%c0_51, %c0_52, %c0_53] : memref<2x32x32xf32, #tpu.memory_space<vmem>>, vector<1x32x32xf32>
    %141 = vector.shape_cast %140 : vector<1x32x32xf32> to vector<32x32xf32>
    %cst_54 = arith.constant dense<0.000000e+00> : vector<16x32xf32>
    %142 = tpu.matmul %139, %141, %cst_54 {dimension_numbers = #tpu.dot_dimension_numbers<[1], [0], [0], [1], [0, 0, 1, 1], [], []>} : vector<16x32xf32>, vector<32x32xf32>, vector<16x32xf32> -> vector<16x32xf32>
    %c0_55 = arith.constant 0 : index
    %c0_56 = arith.constant 0 : index
    %c0_57 = arith.constant 0 : index
    %143 = vector.load %arg12[%c0_55, %c0_56, %c0_57] : memref<2x1x32xf32, #tpu.memory_space<vmem>>, vector<1x1x32xf32>
    %144 = vector.shape_cast %143 : vector<1x1x32xf32> to vector<1x32xf32>
    %145 = vector.broadcast %144 : vector<1x32xf32> to vector<16x32xf32>
    %146 = arith.addf %142, %145 : vector<16x32xf32>
    %147 = arith.addf %146, %46 : vector<16x32xf32>
    %c0_58 = arith.constant 0 : index
    %c0_59 = arith.constant 0 : index
    %c0_60 = arith.constant 0 : index
    %148 = vector.load %arg13[%c0_58, %c0_59, %c0_60] : memref<2x1x32xf32, #tpu.memory_space<vmem>>, vector<1x1x32xf32>
    %149 = vector.shape_cast %148 : vector<1x1x32xf32> to vector<1x32xf32>
    %c0_61 = arith.constant 0 : index
    %c0_62 = arith.constant 0 : index
    %c0_63 = arith.constant 0 : index
    %150 = vector.load %arg14[%c0_61, %c0_62, %c0_63] : memref<2x1x32xf32, #tpu.memory_space<vmem>>, vector<1x1x32xf32>
    %151 = vector.shape_cast %150 : vector<1x1x32xf32> to vector<1x32xf32>
    %cst_64 = arith.constant dense<0.000000e+00> : vector<16xf32>
    %152 = vector.multi_reduction <add>, %147, %cst_64 [1] : vector<16x32xf32> to vector<16xf32>
    %153 = vector.shape_cast %152 : vector<16xf32> to vector<16x1xf32>
    %cst_65 = arith.constant 3.200000e+01 : f32
    %154 = vector.broadcast %cst_65 : f32 to vector<16x1xf32>
    %155 = arith.divf %153, %154 : vector<16x1xf32>
    %156 = vector.broadcast %155 : vector<16x1xf32> to vector<16x32xf32>
    %157 = arith.subf %147, %156 : vector<16x32xf32>
    %158 = arith.mulf %157, %157 : vector<16x32xf32>
    %cst_66 = arith.constant dense<0.000000e+00> : vector<16xf32>
    %159 = vector.multi_reduction <add>, %158, %cst_66 [1] : vector<16x32xf32> to vector<16xf32>
    %160 = vector.shape_cast %159 : vector<16xf32> to vector<16x1xf32>
    %cst_67 = arith.constant 3.200000e+01 : f32
    %161 = vector.broadcast %cst_67 : f32 to vector<16x1xf32>
    %162 = arith.divf %160, %161 : vector<16x1xf32>
    %163 = vector.broadcast %155 : vector<16x1xf32> to vector<16x32xf32>
    %164 = arith.subf %147, %163 : vector<16x32xf32>
    %cst_68 = arith.constant 9.99999996E-13 : f32
    %165 = vector.broadcast %cst_68 : f32 to vector<16x1xf32>
    %166 = arith.addf %162, %165 : vector<16x1xf32>
    %167 = math.rsqrt %166 : vector<16x1xf32>
    %168 = vector.broadcast %167 : vector<16x1xf32> to vector<16x32xf32>
    %169 = arith.mulf %164, %168 : vector<16x32xf32>
    %170 = vector.broadcast %149 : vector<1x32xf32> to vector<16x32xf32>
    %171 = arith.mulf %169, %170 : vector<16x32xf32>
    %172 = vector.broadcast %151 : vector<1x32xf32> to vector<16x32xf32>
    %173 = arith.addf %171, %172 : vector<16x32xf32>
    %c0_69 = arith.constant 0 : index
    %c0_70 = arith.constant 0 : index
    %c0_71 = arith.constant 0 : index
    %174 = vector.load %arg15[%c0_69, %c0_70, %c0_71] : memref<2x32x64xf32, #tpu.memory_space<vmem>>, vector<1x32x64xf32>
    %175 = vector.shape_cast %174 : vector<1x32x64xf32> to vector<32x64xf32>
    %cst_72 = arith.constant dense<0.000000e+00> : vector<16x64xf32>
    %176 = tpu.matmul %173, %175, %cst_72 {dimension_numbers = #tpu.dot_dimension_numbers<[1], [0], [0], [1], [0, 0, 1, 1], [], []>} : vector<16x32xf32>, vector<32x64xf32>, vector<16x64xf32> -> vector<16x64xf32>
    %c0_73 = arith.constant 0 : index
    %c0_74 = arith.constant 0 : index
    %c0_75 = arith.constant 0 : index
    %177 = vector.load %arg16[%c0_73, %c0_74, %c0_75] : memref<2x1x64xf32, #tpu.memory_space<vmem>>, vector<1x1x64xf32>
    %178 = vector.shape_cast %177 : vector<1x1x64xf32> to vector<1x64xf32>
    %179 = vector.broadcast %178 : vector<1x64xf32> to vector<16x64xf32>
    %180 = arith.addf %176, %179 : vector<16x64xf32>
    %181 = arith.mulf %180, %180 : vector<16x64xf32>
    %182 = arith.mulf %180, %181 : vector<16x64xf32>
    %cst_76 = arith.constant 4.471500e-02 : f32
    %183 = vector.broadcast %cst_76 : f32 to vector<16x64xf32>
    %184 = arith.mulf %183, %182 : vector<16x64xf32>
    %185 = arith.addf %180, %184 : vector<16x64xf32>
    %cst_77 = arith.constant 0.797884583 : f32
    %186 = vector.broadcast %cst_77 : f32 to vector<16x64xf32>
    %187 = arith.mulf %186, %185 : vector<16x64xf32>
    %188 = math.tanh %187 : vector<16x64xf32>
    %cst_78 = arith.constant 1.000000e+00 : f32
    %189 = vector.broadcast %cst_78 : f32 to vector<16x64xf32>
    %190 = arith.addf %189, %188 : vector<16x64xf32>
    %cst_79 = arith.constant 5.000000e-01 : f32
    %191 = vector.broadcast %cst_79 : f32 to vector<16x64xf32>
    %192 = arith.mulf %191, %190 : vector<16x64xf32>
    %193 = arith.mulf %180, %192 : vector<16x64xf32>
    %c0_80 = arith.constant 0 : index
    %c0_81 = arith.constant 0 : index
    %c0_82 = arith.constant 0 : index
    %194 = vector.load %arg17[%c0_80, %c0_81, %c0_82] : memref<2x64x32xf32, #tpu.memory_space<vmem>>, vector<1x64x32xf32>
    %195 = vector.shape_cast %194 : vector<1x64x32xf32> to vector<64x32xf32>
    %cst_83 = arith.constant dense<0.000000e+00> : vector<16x32xf32>
    %196 = tpu.matmul %193, %195, %cst_83 {dimension_numbers = #tpu.dot_dimension_numbers<[1], [0], [0], [1], [0, 0, 1, 1], [], []>} : vector<16x64xf32>, vector<64x32xf32>, vector<16x32xf32> -> vector<16x32xf32>
    %c0_84 = arith.constant 0 : index
    %c0_85 = arith.constant 0 : index
    %c0_86 = arith.constant 0 : index
    %197 = vector.load %arg18[%c0_84, %c0_85, %c0_86] : memref<2x1x32xf32, #tpu.memory_space<vmem>>, vector<1x1x32xf32>
    %198 = vector.shape_cast %197 : vector<1x1x32xf32> to vector<1x32xf32>
    %199 = vector.broadcast %198 : vector<1x32xf32> to vector<16x32xf32>
    %200 = arith.addf %196, %199 : vector<16x32xf32>
    %201 = arith.addf %200, %173 : vector<16x32xf32>
    %c0_87 = arith.constant 0 : index
    %c0_88 = arith.constant 0 : index
    %c0_89 = arith.constant 0 : index
    %202 = vector.load %arg19[%c0_87, %c0_88, %c0_89] : memref<2x1x32xf32, #tpu.memory_space<vmem>>, vector<1x1x32xf32>
    %203 = vector.shape_cast %202 : vector<1x1x32xf32> to vector<1x32xf32>
    %c0_90 = arith.constant 0 : index
    %c0_91 = arith.constant 0 : index
    %c0_92 = arith.constant 0 : index
    %204 = vector.load %arg20[%c0_90, %c0_91, %c0_92] : memref<2x1x32xf32, #tpu.memory_space<vmem>>, vector<1x1x32xf32>
    %205 = vector.shape_cast %204 : vector<1x1x32xf32> to vector<1x32xf32>
    %cst_93 = arith.constant dense<0.000000e+00> : vector<16xf32>
    %206 = vector.multi_reduction <add>, %201, %cst_93 [1] : vector<16x32xf32> to vector<16xf32>
    %207 = vector.shape_cast %206 : vector<16xf32> to vector<16x1xf32>
    %cst_94 = arith.constant 3.200000e+01 : f32
    %208 = vector.broadcast %cst_94 : f32 to vector<16x1xf32>
    %209 = arith.divf %207, %208 : vector<16x1xf32>
    %210 = vector.broadcast %209 : vector<16x1xf32> to vector<16x32xf32>
    %211 = arith.subf %201, %210 : vector<16x32xf32>
    %212 = arith.mulf %211, %211 : vector<16x32xf32>
    %cst_95 = arith.constant dense<0.000000e+00> : vector<16xf32>
    %213 = vector.multi_reduction <add>, %212, %cst_95 [1] : vector<16x32xf32> to vector<16xf32>
    %214 = vector.shape_cast %213 : vector<16xf32> to vector<16x1xf32>
    %cst_96 = arith.constant 3.200000e+01 : f32
    %215 = vector.broadcast %cst_96 : f32 to vector<16x1xf32>
    %216 = arith.divf %214, %215 : vector<16x1xf32>
    %217 = vector.broadcast %209 : vector<16x1xf32> to vector<16x32xf32>
    %218 = arith.subf %201, %217 : vector<16x32xf32>
    %cst_97 = arith.constant 9.99999996E-13 : f32
    %219 = vector.broadcast %cst_97 : f32 to vector<16x1xf32>
    %220 = arith.addf %216, %219 : vector<16x1xf32>
    %221 = math.rsqrt %220 : vector<16x1xf32>
    %222 = vector.broadcast %221 : vector<16x1xf32> to vector<16x32xf32>
    %223 = arith.mulf %218, %222 : vector<16x32xf32>
    %224 = vector.broadcast %203 : vector<1x32xf32> to vector<16x32xf32>
    %225 = arith.mulf %223, %224 : vector<16x32xf32>
    %226 = vector.broadcast %205 : vector<1x32xf32> to vector<16x32xf32>
    %227 = arith.addf %225, %226 : vector<16x32xf32>
    %c1 = arith.constant 1 : index
    %c0_98 = arith.constant 0 : index
    %c0_99 = arith.constant 0 : index
    %228 = vector.load %arg9[%c1, %c0_98, %c0_99] : memref<2x32x96xf32, #tpu.memory_space<vmem>>, vector<1x32x96xf32>
    %229 = vector.shape_cast %228 : vector<1x32x96xf32> to vector<32x96xf32>
    %cst_100 = arith.constant dense<0.000000e+00> : vector<16x96xf32>
    %230 = tpu.matmul %227, %229, %cst_100 {dimension_numbers = #tpu.dot_dimension_numbers<[1], [0], [0], [1], [0, 0, 1, 1], [], []>} : vector<16x32xf32>, vector<32x96xf32>, vector<16x96xf32> -> vector<16x96xf32>
    %c1_101 = arith.constant 1 : index
    %c0_102 = arith.constant 0 : index
    %c0_103 = arith.constant 0 : index
    %231 = vector.load %arg10[%c1_101, %c0_102, %c0_103] : memref<2x1x96xf32, #tpu.memory_space<vmem>>, vector<1x1x96xf32>
    %232 = vector.shape_cast %231 : vector<1x1x96xf32> to vector<1x96xf32>
    %233 = vector.broadcast %232 : vector<1x96xf32> to vector<16x96xf32>
    %234 = arith.addf %230, %233 : vector<16x96xf32>
    %235 = vector.extract_strided_slice %51 {offsets = [0, 0], sizes = [1, 8], strides = [1, 1]} : vector<2x8xf32> to vector<1x8xf32>
    %236 = vector.extract_strided_slice %234 {offsets = [0, 0], sizes = [8, 16], strides = [1, 1]} : vector<16x96xf32> to vector<8x16xf32>
    %237 = vector.extract_strided_slice %234 {offsets = [0, 32], sizes = [8, 16], strides = [1, 1]} : vector<16x96xf32> to vector<8x16xf32>
    %238 = vector.extract_strided_slice %234 {offsets = [0, 64], sizes = [8, 16], strides = [1, 1]} : vector<16x96xf32> to vector<8x16xf32>
    %cst_104 = arith.constant dense<0.000000e+00> : vector<8x8xf32>
    %239 = tpu.matmul %236, %237, %cst_104 {dimension_numbers = #tpu.dot_dimension_numbers<[1], [1], [0], [0], [0, 0, 1, 0], [], []>} : vector<8x16xf32>, vector<8x16xf32>, vector<8x8xf32> -> vector<8x8xf32>
    %cst_105 = arith.constant 2.500000e-01 : f32
    %240 = vector.broadcast %cst_105 : f32 to vector<8x8xf32>
    %241 = arith.mulf %239, %240 : vector<8x8xf32>
    %242 = vector.broadcast %235 : vector<1x8xf32> to vector<8x8xf32>
    %243 = arith.addf %241, %242 : vector<8x8xf32>
    %cst_106 = arith.constant dense<0xFF800000> : vector<8xf32>
    %244 = vector.multi_reduction <maximumf>, %243, %cst_106 [1] : vector<8x8xf32> to vector<8xf32>
    %245 = vector.shape_cast %244 : vector<8xf32> to vector<8x1xf32>
    %246 = vector.broadcast %245 : vector<8x1xf32> to vector<8x8xf32>
    %247 = arith.subf %243, %246 : vector<8x8xf32>
    %248 = math.exp %247 : vector<8x8xf32>
    %cst_107 = arith.constant dense<0.000000e+00> : vector<8xf32>
    %249 = vector.multi_reduction <add>, %248, %cst_107 [1] : vector<8x8xf32> to vector<8xf32>
    %250 = vector.shape_cast %249 : vector<8xf32> to vector<8x1xf32>
    %251 = tpu.reciprocal %250 {approx = true} : vector<8x1xf32> -> vector<8x1xf32>
    %252 = vector.broadcast %251 : vector<8x1xf32> to vector<8x8xf32>
    %253 = arith.mulf %248, %252 : vector<8x8xf32>
    %cst_108 = arith.constant dense<0.000000e+00> : vector<8x16xf32>
    %254 = tpu.matmul %253, %238, %cst_108 {dimension_numbers = #tpu.dot_dimension_numbers<[1], [0], [0], [1], [0, 0, 1, 1], [], []>} : vector<8x8xf32>, vector<8x16xf32>, vector<8x16xf32> -> vector<8x16xf32>
    %255 = vector.extract_strided_slice %234 {offsets = [0, 16], sizes = [8, 16], strides = [1, 1]} : vector<16x96xf32> to vector<8x16xf32>
    %256 = vector.extract_strided_slice %234 {offsets = [0, 48], sizes = [8, 16], strides = [1, 1]} : vector<16x96xf32> to vector<8x16xf32>
    %257 = vector.extract_strided_slice %234 {offsets = [0, 80], sizes = [8, 16], strides = [1, 1]} : vector<16x96xf32> to vector<8x16xf32>
    %cst_109 = arith.constant dense<0.000000e+00> : vector<8x8xf32>
    %258 = tpu.matmul %255, %256, %cst_109 {dimension_numbers = #tpu.dot_dimension_numbers<[1], [1], [0], [0], [0, 0, 1, 0], [], []>} : vector<8x16xf32>, vector<8x16xf32>, vector<8x8xf32> -> vector<8x8xf32>
    %cst_110 = arith.constant 2.500000e-01 : f32
    %259 = vector.broadcast %cst_110 : f32 to vector<8x8xf32>
    %260 = arith.mulf %258, %259 : vector<8x8xf32>
    %261 = vector.broadcast %235 : vector<1x8xf32> to vector<8x8xf32>
    %262 = arith.addf %260, %261 : vector<8x8xf32>
    %cst_111 = arith.constant dense<0xFF800000> : vector<8xf32>
    %263 = vector.multi_reduction <maximumf>, %262, %cst_111 [1] : vector<8x8xf32> to vector<8xf32>
    %264 = vector.shape_cast %263 : vector<8xf32> to vector<8x1xf32>
    %265 = vector.broadcast %264 : vector<8x1xf32> to vector<8x8xf32>
    %266 = arith.subf %262, %265 : vector<8x8xf32>
    %267 = math.exp %266 : vector<8x8xf32>
    %cst_112 = arith.constant dense<0.000000e+00> : vector<8xf32>
    %268 = vector.multi_reduction <add>, %267, %cst_112 [1] : vector<8x8xf32> to vector<8xf32>
    %269 = vector.shape_cast %268 : vector<8xf32> to vector<8x1xf32>
    %270 = tpu.reciprocal %269 {approx = true} : vector<8x1xf32> -> vector<8x1xf32>
    %271 = vector.broadcast %270 : vector<8x1xf32> to vector<8x8xf32>
    %272 = arith.mulf %267, %271 : vector<8x8xf32>
    %cst_113 = arith.constant dense<0.000000e+00> : vector<8x16xf32>
    %273 = tpu.matmul %272, %257, %cst_113 {dimension_numbers = #tpu.dot_dimension_numbers<[1], [0], [0], [1], [0, 0, 1, 1], [], []>} : vector<8x8xf32>, vector<8x16xf32>, vector<8x16xf32> -> vector<8x16xf32>
    %274 = tpu.concatenate %254, %273 in 1 : vector<8x16xf32>, vector<8x16xf32> -> vector<8x32xf32>
    %275 = vector.extract_strided_slice %51 {offsets = [1, 0], sizes = [1, 8], strides = [1, 1]} : vector<2x8xf32> to vector<1x8xf32>
    %276 = vector.extract_strided_slice %234 {offsets = [8, 0], sizes = [8, 16], strides = [1, 1]} : vector<16x96xf32> to vector<8x16xf32>
    %277 = vector.extract_strided_slice %234 {offsets = [8, 32], sizes = [8, 16], strides = [1, 1]} : vector<16x96xf32> to vector<8x16xf32>
    %278 = vector.extract_strided_slice %234 {offsets = [8, 64], sizes = [8, 16], strides = [1, 1]} : vector<16x96xf32> to vector<8x16xf32>
    %cst_114 = arith.constant dense<0.000000e+00> : vector<8x8xf32>
    %279 = tpu.matmul %276, %277, %cst_114 {dimension_numbers = #tpu.dot_dimension_numbers<[1], [1], [0], [0], [0, 0, 1, 0], [], []>} : vector<8x16xf32>, vector<8x16xf32>, vector<8x8xf32> -> vector<8x8xf32>
    %cst_115 = arith.constant 2.500000e-01 : f32
    %280 = vector.broadcast %cst_115 : f32 to vector<8x8xf32>
    %281 = arith.mulf %279, %280 : vector<8x8xf32>
    %282 = vector.broadcast %275 : vector<1x8xf32> to vector<8x8xf32>
    %283 = arith.addf %281, %282 : vector<8x8xf32>
    %cst_116 = arith.constant dense<0xFF800000> : vector<8xf32>
    %284 = vector.multi_reduction <maximumf>, %283, %cst_116 [1] : vector<8x8xf32> to vector<8xf32>
    %285 = vector.shape_cast %284 : vector<8xf32> to vector<8x1xf32>
    %286 = vector.broadcast %285 : vector<8x1xf32> to vector<8x8xf32>
    %287 = arith.subf %283, %286 : vector<8x8xf32>
    %288 = math.exp %287 : vector<8x8xf32>
    %cst_117 = arith.constant dense<0.000000e+00> : vector<8xf32>
    %289 = vector.multi_reduction <add>, %288, %cst_117 [1] : vector<8x8xf32> to vector<8xf32>
    %290 = vector.shape_cast %289 : vector<8xf32> to vector<8x1xf32>
    %291 = tpu.reciprocal %290 {approx = true} : vector<8x1xf32> -> vector<8x1xf32>
    %292 = vector.broadcast %291 : vector<8x1xf32> to vector<8x8xf32>
    %293 = arith.mulf %288, %292 : vector<8x8xf32>
    %cst_118 = arith.constant dense<0.000000e+00> : vector<8x16xf32>
    %294 = tpu.matmul %293, %278, %cst_118 {dimension_numbers = #tpu.dot_dimension_numbers<[1], [0], [0], [1], [0, 0, 1, 1], [], []>} : vector<8x8xf32>, vector<8x16xf32>, vector<8x16xf32> -> vector<8x16xf32>
    %295 = vector.extract_strided_slice %234 {offsets = [8, 16], sizes = [8, 16], strides = [1, 1]} : vector<16x96xf32> to vector<8x16xf32>
    %296 = vector.extract_strided_slice %234 {offsets = [8, 48], sizes = [8, 16], strides = [1, 1]} : vector<16x96xf32> to vector<8x16xf32>
    %297 = vector.extract_strided_slice %234 {offsets = [8, 80], sizes = [8, 16], strides = [1, 1]} : vector<16x96xf32> to vector<8x16xf32>
    %cst_119 = arith.constant dense<0.000000e+00> : vector<8x8xf32>
    %298 = tpu.matmul %295, %296, %cst_119 {dimension_numbers = #tpu.dot_dimension_numbers<[1], [1], [0], [0], [0, 0, 1, 0], [], []>} : vector<8x16xf32>, vector<8x16xf32>, vector<8x8xf32> -> vector<8x8xf32>
    %cst_120 = arith.constant 2.500000e-01 : f32
    %299 = vector.broadcast %cst_120 : f32 to vector<8x8xf32>
    %300 = arith.mulf %298, %299 : vector<8x8xf32>
    %301 = vector.broadcast %275 : vector<1x8xf32> to vector<8x8xf32>
    %302 = arith.addf %300, %301 : vector<8x8xf32>
    %cst_121 = arith.constant dense<0xFF800000> : vector<8xf32>
    %303 = vector.multi_reduction <maximumf>, %302, %cst_121 [1] : vector<8x8xf32> to vector<8xf32>
    %304 = vector.shape_cast %303 : vector<8xf32> to vector<8x1xf32>
    %305 = vector.broadcast %304 : vector<8x1xf32> to vector<8x8xf32>
    %306 = arith.subf %302, %305 : vector<8x8xf32>
    %307 = math.exp %306 : vector<8x8xf32>
    %cst_122 = arith.constant dense<0.000000e+00> : vector<8xf32>
    %308 = vector.multi_reduction <add>, %307, %cst_122 [1] : vector<8x8xf32> to vector<8xf32>
    %309 = vector.shape_cast %308 : vector<8xf32> to vector<8x1xf32>
    %310 = tpu.reciprocal %309 {approx = true} : vector<8x1xf32> -> vector<8x1xf32>
    %311 = vector.broadcast %310 : vector<8x1xf32> to vector<8x8xf32>
    %312 = arith.mulf %307, %311 : vector<8x8xf32>
    %cst_123 = arith.constant dense<0.000000e+00> : vector<8x16xf32>
    %313 = tpu.matmul %312, %297, %cst_123 {dimension_numbers = #tpu.dot_dimension_numbers<[1], [0], [0], [1], [0, 0, 1, 1], [], []>} : vector<8x8xf32>, vector<8x16xf32>, vector<8x16xf32> -> vector<8x16xf32>
    %314 = tpu.concatenate %294, %313 in 1 : vector<8x16xf32>, vector<8x16xf32> -> vector<8x32xf32>
    %315 = tpu.concatenate %274, %314 in 0 : vector<8x32xf32>, vector<8x32xf32> -> vector<16x32xf32>
    %c1_124 = arith.constant 1 : index
    %c0_125 = arith.constant 0 : index
    %c0_126 = arith.constant 0 : index
    %316 = vector.load %arg11[%c1_124, %c0_125, %c0_126] : memref<2x32x32xf32, #tpu.memory_space<vmem>>, vector<1x32x32xf32>
    %317 = vector.shape_cast %316 : vector<1x32x32xf32> to vector<32x32xf32>
    %cst_127 = arith.constant dense<0.000000e+00> : vector<16x32xf32>
    %318 = tpu.matmul %315, %317, %cst_127 {dimension_numbers = #tpu.dot_dimension_numbers<[1], [0], [0], [1], [0, 0, 1, 1], [], []>} : vector<16x32xf32>, vector<32x32xf32>, vector<16x32xf32> -> vector<16x32xf32>
    %c1_128 = arith.constant 1 : index
    %c0_129 = arith.constant 0 : index
    %c0_130 = arith.constant 0 : index
    %319 = vector.load %arg12[%c1_128, %c0_129, %c0_130] : memref<2x1x32xf32, #tpu.memory_space<vmem>>, vector<1x1x32xf32>
    %320 = vector.shape_cast %319 : vector<1x1x32xf32> to vector<1x32xf32>
    %321 = vector.broadcast %320 : vector<1x32xf32> to vector<16x32xf32>
    %322 = arith.addf %318, %321 : vector<16x32xf32>
    %323 = arith.addf %322, %227 : vector<16x32xf32>
    %c1_131 = arith.constant 1 : index
    %c0_132 = arith.constant 0 : index
    %c0_133 = arith.constant 0 : index
    %324 = vector.load %arg13[%c1_131, %c0_132, %c0_133] : memref<2x1x32xf32, #tpu.memory_space<vmem>>, vector<1x1x32xf32>
    %325 = vector.shape_cast %324 : vector<1x1x32xf32> to vector<1x32xf32>
    %c1_134 = arith.constant 1 : index
    %c0_135 = arith.constant 0 : index
    %c0_136 = arith.constant 0 : index
    %326 = vector.load %arg14[%c1_134, %c0_135, %c0_136] : memref<2x1x32xf32, #tpu.memory_space<vmem>>, vector<1x1x32xf32>
    %327 = vector.shape_cast %326 : vector<1x1x32xf32> to vector<1x32xf32>
    %cst_137 = arith.constant dense<0.000000e+00> : vector<16xf32>
    %328 = vector.multi_reduction <add>, %323, %cst_137 [1] : vector<16x32xf32> to vector<16xf32>
    %329 = vector.shape_cast %328 : vector<16xf32> to vector<16x1xf32>
    %cst_138 = arith.constant 3.200000e+01 : f32
    %330 = vector.broadcast %cst_138 : f32 to vector<16x1xf32>
    %331 = arith.divf %329, %330 : vector<16x1xf32>
    %332 = vector.broadcast %331 : vector<16x1xf32> to vector<16x32xf32>
    %333 = arith.subf %323, %332 : vector<16x32xf32>
    %334 = arith.mulf %333, %333 : vector<16x32xf32>
    %cst_139 = arith.constant dense<0.000000e+00> : vector<16xf32>
    %335 = vector.multi_reduction <add>, %334, %cst_139 [1] : vector<16x32xf32> to vector<16xf32>
    %336 = vector.shape_cast %335 : vector<16xf32> to vector<16x1xf32>
    %cst_140 = arith.constant 3.200000e+01 : f32
    %337 = vector.broadcast %cst_140 : f32 to vector<16x1xf32>
    %338 = arith.divf %336, %337 : vector<16x1xf32>
    %339 = vector.broadcast %331 : vector<16x1xf32> to vector<16x32xf32>
    %340 = arith.subf %323, %339 : vector<16x32xf32>
    %cst_141 = arith.constant 9.99999996E-13 : f32
    %341 = vector.broadcast %cst_141 : f32 to vector<16x1xf32>
    %342 = arith.addf %338, %341 : vector<16x1xf32>
    %343 = math.rsqrt %342 : vector<16x1xf32>
    %344 = vector.broadcast %343 : vector<16x1xf32> to vector<16x32xf32>
    %345 = arith.mulf %340, %344 : vector<16x32xf32>
    %346 = vector.broadcast %325 : vector<1x32xf32> to vector<16x32xf32>
    %347 = arith.mulf %345, %346 : vector<16x32xf32>
    %348 = vector.broadcast %327 : vector<1x32xf32> to vector<16x32xf32>
    %349 = arith.addf %347, %348 : vector<16x32xf32>
    %c1_142 = arith.constant 1 : index
    %c0_143 = arith.constant 0 : index
    %c0_144 = arith.constant 0 : index
    %350 = vector.load %arg15[%c1_142, %c0_143, %c0_144] : memref<2x32x64xf32, #tpu.memory_space<vmem>>, vector<1x32x64xf32>
    %351 = vector.shape_cast %350 : vector<1x32x64xf32> to vector<32x64xf32>
    %cst_145 = arith.constant dense<0.000000e+00> : vector<16x64xf32>
    %352 = tpu.matmul %349, %351, %cst_145 {dimension_numbers = #tpu.dot_dimension_numbers<[1], [0], [0], [1], [0, 0, 1, 1], [], []>} : vector<16x32xf32>, vector<32x64xf32>, vector<16x64xf32> -> vector<16x64xf32>
    %c1_146 = arith.constant 1 : index
    %c0_147 = arith.constant 0 : index
    %c0_148 = arith.constant 0 : index
    %353 = vector.load %arg16[%c1_146, %c0_147, %c0_148] : memref<2x1x64xf32, #tpu.memory_space<vmem>>, vector<1x1x64xf32>
    %354 = vector.shape_cast %353 : vector<1x1x64xf32> to vector<1x64xf32>
    %355 = vector.broadcast %354 : vector<1x64xf32> to vector<16x64xf32>
    %356 = arith.addf %352, %355 : vector<16x64xf32>
    %357 = arith.mulf %356, %356 : vector<16x64xf32>
    %358 = arith.mulf %356, %357 : vector<16x64xf32>
    %cst_149 = arith.constant 4.471500e-02 : f32
    %359 = vector.broadcast %cst_149 : f32 to vector<16x64xf32>
    %360 = arith.mulf %359, %358 : vector<16x64xf32>
    %361 = arith.addf %356, %360 : vector<16x64xf32>
    %cst_150 = arith.constant 0.797884583 : f32
    %362 = vector.broadcast %cst_150 : f32 to vector<16x64xf32>
    %363 = arith.mulf %362, %361 : vector<16x64xf32>
    %364 = math.tanh %363 : vector<16x64xf32>
    %cst_151 = arith.constant 1.000000e+00 : f32
    %365 = vector.broadcast %cst_151 : f32 to vector<16x64xf32>
    %366 = arith.addf %365, %364 : vector<16x64xf32>
    %cst_152 = arith.constant 5.000000e-01 : f32
    %367 = vector.broadcast %cst_152 : f32 to vector<16x64xf32>
    %368 = arith.mulf %367, %366 : vector<16x64xf32>
    %369 = arith.mulf %356, %368 : vector<16x64xf32>
    %c1_153 = arith.constant 1 : index
    %c0_154 = arith.constant 0 : index
    %c0_155 = arith.constant 0 : index
    %370 = vector.load %arg17[%c1_153, %c0_154, %c0_155] : memref<2x64x32xf32, #tpu.memory_space<vmem>>, vector<1x64x32xf32>
    %371 = vector.shape_cast %370 : vector<1x64x32xf32> to vector<64x32xf32>
    %cst_156 = arith.constant dense<0.000000e+00> : vector<16x32xf32>
    %372 = tpu.matmul %369, %371, %cst_156 {dimension_numbers = #tpu.dot_dimension_numbers<[1], [0], [0], [1], [0, 0, 1, 1], [], []>} : vector<16x64xf32>, vector<64x32xf32>, vector<16x32xf32> -> vector<16x32xf32>
    %c1_157 = arith.constant 1 : index
    %c0_158 = arith.constant 0 : index
    %c0_159 = arith.constant 0 : index
    %373 = vector.load %arg18[%c1_157, %c0_158, %c0_159] : memref<2x1x32xf32, #tpu.memory_space<vmem>>, vector<1x1x32xf32>
    %374 = vector.shape_cast %373 : vector<1x1x32xf32> to vector<1x32xf32>
    %375 = vector.broadcast %374 : vector<1x32xf32> to vector<16x32xf32>
    %376 = arith.addf %372, %375 : vector<16x32xf32>
    %377 = arith.addf %376, %349 : vector<16x32xf32>
    %c1_160 = arith.constant 1 : index
    %c0_161 = arith.constant 0 : index
    %c0_162 = arith.constant 0 : index
    %378 = vector.load %arg19[%c1_160, %c0_161, %c0_162] : memref<2x1x32xf32, #tpu.memory_space<vmem>>, vector<1x1x32xf32>
    %379 = vector.shape_cast %378 : vector<1x1x32xf32> to vector<1x32xf32>
    %c1_163 = arith.constant 1 : index
    %c0_164 = arith.constant 0 : index
    %c0_165 = arith.constant 0 : index
    %380 = vector.load %arg20[%c1_163, %c0_164, %c0_165] : memref<2x1x32xf32, #tpu.memory_space<vmem>>, vector<1x1x32xf32>
    %381 = vector.shape_cast %380 : vector<1x1x32xf32> to vector<1x32xf32>
    %cst_166 = arith.constant dense<0.000000e+00> : vector<16xf32>
    %382 = vector.multi_reduction <add>, %377, %cst_166 [1] : vector<16x32xf32> to vector<16xf32>
    %383 = vector.shape_cast %382 : vector<16xf32> to vector<16x1xf32>
    %cst_167 = arith.constant 3.200000e+01 : f32
    %384 = vector.broadcast %cst_167 : f32 to vector<16x1xf32>
    %385 = arith.divf %383, %384 : vector<16x1xf32>
    %386 = vector.broadcast %385 : vector<16x1xf32> to vector<16x32xf32>
    %387 = arith.subf %377, %386 : vector<16x32xf32>
    %388 = arith.mulf %387, %387 : vector<16x32xf32>
    %cst_168 = arith.constant dense<0.000000e+00> : vector<16xf32>
    %389 = vector.multi_reduction <add>, %388, %cst_168 [1] : vector<16x32xf32> to vector<16xf32>
    %390 = vector.shape_cast %389 : vector<16xf32> to vector<16x1xf32>
    %cst_169 = arith.constant 3.200000e+01 : f32
    %391 = vector.broadcast %cst_169 : f32 to vector<16x1xf32>
    %392 = arith.divf %390, %391 : vector<16x1xf32>
    %393 = vector.broadcast %385 : vector<16x1xf32> to vector<16x32xf32>
    %394 = arith.subf %377, %393 : vector<16x32xf32>
    %cst_170 = arith.constant 9.99999996E-13 : f32
    %395 = vector.broadcast %cst_170 : f32 to vector<16x1xf32>
    %396 = arith.addf %392, %395 : vector<16x1xf32>
    %397 = math.rsqrt %396 : vector<16x1xf32>
    %398 = vector.broadcast %397 : vector<16x1xf32> to vector<16x32xf32>
    %399 = arith.mulf %394, %398 : vector<16x32xf32>
    %400 = vector.broadcast %379 : vector<1x32xf32> to vector<16x32xf32>
    %401 = arith.mulf %399, %400 : vector<16x32xf32>
    %402 = vector.broadcast %381 : vector<1x32xf32> to vector<16x32xf32>
    %403 = arith.addf %401, %402 : vector<16x32xf32>
    %404 = vector.extract_strided_slice %403 {offsets = [0, 0], sizes = [1, 32], strides = [1, 1]} : vector<16x32xf32> to vector<1x32xf32>
    %c0_171 = arith.constant 0 : index
    %c0_172 = arith.constant 0 : index
    %405 = vector.load %arg21[%c0_171, %c0_172] : memref<2x32xf32, #tpu.memory_space<vmem>>, vector<1x32xf32>
    tpu.vector_store %arg21[%c0_171, %c0_172], %404 {strides = array<i32>} : memref<2x32xf32, #tpu.memory_space<vmem>>, vector<1x32xf32>,
    %406 = vector.extract_strided_slice %403 {offsets = [8, 0], sizes = [1, 32], strides = [1, 1]} : vector<16x32xf32> to vector<1x32xf32>
    %c1_173 = arith.constant 1 : index
    %c0_174 = arith.constant 0 : index
    %407 = vector.load %arg21[%c1_173, %c0_174] : memref<2x32xf32, #tpu.memory_space<vmem>>, vector<1x32xf32>
    tpu.vector_store %arg21[%c1_173, %c0_174], %406 {strides = array<i32>} : memref<2x32xf32, #tpu.memory_space<vmem>>, vector<1x32xf32>,
    return
  }
}

</mosaic_0001>

<bundles_post_ra>
// kernel: tpu_custom_call.1
= control target key start
LH: loop header
LB: loop body
LE: loop exit
PB: predicated region body
PF: predicated region fallthrough
CT: control target
= control target key end

     0   :  { %s3840_s0 = inlined_call_operand.vmem [shape: s32[16,1], index: 0, kind: input, shape index: {}]   ;;  %s3841_s1 = inlined_call_operand.vmem [shape: s32[16,1], index: 1, kind: input, shape index: {}]   ;;  %s3842_s2 = inlined_call_operand.vmem [shape: f32[2,8], index: 2, kind: input, shape index: {}]   ;;  %s3843_s3 = inlined_call_operand.vmem [shape: f32[128,32], index: 3, kind: input, shape index: {}]   ;;  %s3844_s4 = inlined_call_operand.vmem [shape: f32[16,32], index: 4, kind: input, shape index: {}]   ;;  %s3845_s5 = inlined_call_operand.vmem [shape: f32[1,32], index: 5, kind: input, shape index: {}]   ;;  %s3846_s6 = inlined_call_operand.vmem [shape: f32[1,32], index: 6, kind: input, shape index: {}]   ;;  %s3847_s7 = inlined_call_operand.vmem [shape: f32[1,32], index: 7, kind: input, shape index: {}]   ;;  %s3848_s8 = inlined_call_operand.vmem [shape: f32[1,32], index: 8, kind: input, shape index: {}]   ;;  %s3849_s9 = inlined_call_operand.vmem [shape: f32[2,32,96], index: 9, kind: input, shape index: {}]   ;;  %s3850_s10 = inlined_call_operand.vmem [shape: f32[2,1,96], index: 10, kind: input, shape index: {}]   ;;  %s3851_s11 = inlined_call_operand.vmem [shape: f32[2,32,32], index: 11, kind: input, shape index: {}]   ;;  %s3852_s12 = inlined_call_operand.vmem [shape: f32[2,1,32], index: 12, kind: input, shape index: {}]   ;;  %s3853_s13 = inlined_call_operand.vmem [shape: f32[2,1,32], index: 13, kind: input, shape index: {}]   ;;  %s3854_s14 = inlined_call_operand.vmem [shape: f32[2,1,32], index: 14, kind: input, shape index: {}]   ;;  %s3855_s15 = inlined_call_operand.vmem [shape: f32[2,32,64], index: 15, kind: input, shape index: {}]   ;;  %s3856_s16 = inlined_call_operand.vmem [shape: f32[2,1,64], index: 16, kind: input, shape index: {}]   ;;  %s3857_s17 = inlined_call_operand.vmem [shape: f32[2,64,32], index: 17, kind: input, shape index: {}]   ;;  %s3858_s18 = inlined_call_operand.vmem [shape: f32[2,1,32], index: 18, kind: input, shape index: {}]   ;;  %s3859_s19 = inlined_call_operand.vmem [shape: f32[2,1,32], index: 19, kind: input, shape index: {}]   ;;  %s3860_s20 = inlined_call_operand.vmem [shape: f32[2,1,32], index: 20, kind: input, shape index: {}]   ;;  %s3861_s21 = inlined_call_operand.hbm [shape: f32[2,32], index: 21, kind: output, shape index: {}]  }
   0x1   :  { %3867 = sst [smem:[#allocation5_spill]] %s3840_s0 }
   0x2   :  { %3868 = sst [smem:[#allocation6_spill]] %s3841_s1 }
   0x3   :  { %3869 = sst [smem:[#allocation7_spill]] %s3842_s2 }
   0x4   :  { %3870 = sst [smem:[#allocation8_spill]] %s3843_s3 }
   0x5   :  { %3871 = sst [smem:[#allocation9_spill]] %s3844_s4 }
   0x6   :  { %3872 = sst [smem:[#allocation10_spill]] %s3845_s5 }
   0x7   :  { %3873 = sst [smem:[#allocation11_spill]] %s3856_s16 }
   0x8   :  { %s3874_s26 = sld [smem:[#allocation5_spill]]  ;;  %s3875_s16 = sld [smem:[#allocation8_spill]]  ;;  %v3241_v2 = vmov 0  }
   0x9   :  { %3155 = vset.pattern.permute.xlu0 %v3241_v2  ;;  %3156 = vset.pattern.permute.xlu1 %v3241_v2 }
   0xe   :  { %v71_v0 = vld [vmem:[%s3874_s26] sm:$0xff]  ;;  %v86_v3 = vld [vmem:[%s3875_s16 + $0x8] sm:$0xff]  ;;  %v87_v4 = vld [vmem:[%s3875_s16 + $0x10] sm:$0xff] }
   0xf   :  { %v85_v1 = vld [vmem:[%s3875_s16] sm:$0xff]  ;;  %v88_v5 = vld [vmem:[%s3875_s16 + $0x18] sm:$0xff]  ;;  %74 = vperm.xlu0 %3155, %v71_v0   ;;  %v72_v8 = vld [vmem:[%s3874_s26 + $0x8] sm:$0xff] }
  0x10   :  { %v3032_v6 = vpack.c.bf16 %v86_v3, %v85_v1  ;;  %v3036_v7 = vpack.c.bf16 %v88_v5, %v87_v4  ;;  %v89_v9 = vld [vmem:[%s3875_s16 + $0x20] sm:$0xff]  ;;  %v90_v10 = vld [vmem:[%s3875_s16 + $0x28] sm:$0xff]  ;;  %v91_v12 = vld [vmem:[%s3875_s16 + $0x30] sm:$0xff] }
  0x11   :  { %v3040_v11 = vpack.c.bf16 %v90_v10, %v89_v9 }
  0x12   :  { %3033 = vmatprep.subr.bf16.mxu0 %v3032_v6 }
  0x13   :  { %3035 = vmatpush3.bf16.msra.mxu0 %v3032_v6  ;;  %77 = vperm.xlu0 %3155, %v72_v8  }
  0x14   :  { %3037 = vmatprep.subr.bf16.mxu0 %v3036_v7 }
  0x15   :  { %26 = vsyncpa [#allocation3], 0  ;;  %v92_v13 = vld [vmem:[%s3875_s16 + $0x38] sm:$0xff]  ;;  %s3876_s4 = sld [smem:[#allocation6_spill]]  ;;  %v93_v18 = vld [vmem:[%s3875_s16 + $0x40] sm:$0xff]  ;;  %v69_v31 = vlaneseq  ;;  %v3242_v34 = vmov 1.0  }
  0x16   :  { %v3044_v17 = vpack.c.bf16 %v92_v13, %v91_v12  ;;  %v94_v19 = vld [vmem:[%s3875_s16 + $0x48] sm:$0xff]  ;;  %v95_v22 = vld [vmem:[%s3875_s16 + $0x50] sm:$0xff]  ;;  %v96_v23 = vld [vmem:[%s3875_s16 + $0x58] sm:$0xff]  ;;  %s3877_s1 = sld [smem:[#allocation10_spill]]  ;;  %s3878_s3 = sld [smem:[#allocation9_spill]]  ;;  %vm212_vm6 = vcmask 261120  }
  0x17   :  { %3039 = vmatpush3.bf16.msra.mxu0 %v3036_v7  ;;  %v3048_v21 = vpack.c.bf16 %v94_v19, %v93_v18  ;;  %v3052_v24 = vpack.c.bf16 %v96_v23, %v95_v22  ;;  %v97_v25 = vld [vmem:[%s3875_s16 + $0x60] sm:$0xff]  ;;  %v98_v26 = vld [vmem:[%s3875_s16 + $0x68] sm:$0xff]  ;;  %v99_v28 = vld [vmem:[%s3875_s16 + $0x70] sm:$0xff]  ;;  %v70_v32 = vand.u32 127, %v69_v31  ;;  %vm3244_vm7 = vmmov 0   ;;  %s3245_s25 = smov 96  }
  0x18   :  { %3041 = vmatprep.subr.bf16.mxu0 %v3040_v11  ;;  %v3056_v27 = vpack.c.bf16 %v98_v26, %v97_v25  ;;  %v100_v29 = vld [vmem:[%s3875_s16 + $0x78] sm:$0xff]  ;;  %v2618_v39 = vld [vmem:[%s3846_s6] ss:$0 sm:$0xff]  ;;  %v260_v63 = vld [vmem:[%s3849_s9 + $0x8] sm:$0xff]  ;;  %s3246_s27 = smov 80   ;;  %vm354_vm8 = vcmask 130048  }
  0x19   :  { %v3060_v30 = vpack.c.bf16 %v100_v29, %v99_v28  ;;  %v259_v62 = vld [vmem:[%s3849_s9] sm:$0xff]  ;;  %v261_v0 = vld [vmem:[%s3849_s9 + $0x10] sm:$0xff]  ;;  %s3879_s6 = sld [smem:[#allocation7_spill]]  ;;  %v3488_v28 = vshrl.u32 %v69_v31, 7  ;;  %vm435_vm9 = vcmask 64512   ;;  %s3248_s29 = smov 64  }
  0x1a   :  { %v3064_v1 = vpack.c.bf16 %v260_v63, %v259_v62  ;;  %v2622_v13 = vld [vmem:[%s3848_s8] ss:$0 sm:$0xff]  ;;  %s3249_s0 = smov 48   ;;  %s3880_s5 = sld [smem:[#allocation11_spill]]  ;;  %vm1300_vm10 = vcmask 523264   ;;  %vm2598_vm11 = vcmask 253952  }
  0x1b   :  { %v101_v14 = vld [vmem:[%s3876_s4] sm:$0xff]  ;;  %v102_v15 = vld [vmem:[%s3876_s4 + $0x8] sm:$0xff]  ;;  %3043 = vmatpush3.bf16.msra.mxu0 %v3040_v11  ;;  %s3250_s4 = smov 16  }
  0x1c   :  { %vm103_vm0 = vcmp.eq.s32.totalorder %v101_v14, 0  ;;  %vm104_vm1 = vcmp.eq.s32.totalorder %v102_v15, 0  ;;  %3045 = vmatprep.subr.bf16.mxu0 %v3044_v17  ;;  %v2617_v38 = vld [vmem:[%s3877_s1] ss:$0 sm:$0xff]  ;;  %v207_v43 = vld [vmem:[%s3878_s3 + $0x8] sm:$0xff]  ;;  %3065 = vmatprep.subr.bf16.mxu1 %v3064_v1 }
  0x1d   :  { %v107_v16 = vsel %vm103_vm0, 1, %v3241_v2  ;;  %v108_v20 = vsel %vm104_vm1, 1, %v3241_v2  ;;  %v206_v46 = vld [vmem:[%s3878_s3] sm:$0xff]  ;;  %v262_v2 = vld [vmem:[%s3849_s9 + $0x18] sm:$0xff]  ;;  %3067 = vmatpush3.bf16.msra.mxu1 %v3064_v1  ;;  %s3247_s3 = smov 112  }
  0x1e   :  { %110 = vperm.xlu1 %3156, %v107_v16   ;;  %v3068_v3 = vpack.c.bf16 %v262_v2, %v261_v0  ;;  %v2621_v11 = vld [vmem:[%s3847_s7] ss:$0 sm:$0xff] }
  0x1f   :  { %3047 = vmatpush3.bf16.msra.mxu0 %v3044_v17 }
  0x20   :  { %3049 = vmatprep.subr.bf16.mxu0 %v3048_v21  ;;  %3069 = vmatprep.subr.bf16.mxu1 %v3068_v3 }
  0x21   :  { %3071 = vmatpush3.bf16.msra.mxu1 %v3068_v3 }
  0x22   :  { %113 = vperm.xlu1 %3156, %v108_v20   ;;  %v3243_v20 = vmov 0.0  }
  0x23   :  { %3051 = vmatpush3.bf16.msra.mxu0 %v3048_v21  ;;  %2859 = vmatprep.subr.mxu1 %v3243_v20  ;;  %v2623_v21 = vld [vmem:[%s3850_s10] ss:$0 sm:$0xff] }
  0x24   :  { %3053 = vmatprep.subr.bf16.mxu0 %v3052_v24 }
  0x27   :  { %3055 = vmatpush3.bf16.msra.mxu0 %v3052_v24 }
  0x28   :  { %3057 = vmatprep.subr.bf16.mxu0 %v3056_v27 }
  0x2b   :  { %3059 = vmatpush3.bf16.msra.mxu0 %v3056_v27  ;;  %v256_v27 = vld [vmem:[%s3879_s6] sm:$0x3] }
  0x2c   :  { %3061 = vmatprep.subr.bf16.mxu0 %v3060_v30  ;;  %v257_v29 = vsub.f32 1.0, %v256_v27 }
  0x2f   :  { %3063 = vmatpush3.bf16.msra.mxu0 %v3060_v30  ;;  %v432_v30 = vsub.s32 0, %v3488_v28 }
  0x30   :  { %2889 = vmatprep.subr.mxu0 %v3243_v20 }
  0x8e   :  { %v75_v33 = vpop.permute.xlu0 %74 }
  0x8f   :  { %vm79_vm2 = vcmp.eq.s32.totalorder %v70_v32, %v75_v33 }
  0x90   :  { %2845 = vmatprep.mubr.msk.f32.mxu0 %vm79_vm2, %v3242_v34 }
  0x92   :  { %v78_v35 = vpop.permute.xlu0 %77 }
  0x93   :  { %vm80_vm3 = vcmp.eq.s32.totalorder %v70_v32, %v78_v35  ;;  %v3491_v32 = vmul.f32 -1e+09, %v257_v29 }
  0x94   :  { %2846 = vmatmul.mubr.msk.f32.vlgmr.msra.gmra.mrb[0].mxu0 %vm80_vm3, %v3242_v34 }
  0x95   :  { %2891 = vmatprep.mubr.msk.f32.mxu0 %vm3244_vm7, %v3243_v20  ;;  %v3494_v33 = vrot.slane %v3491_v32, %v432_v30 }
  0x9d   :  { %v111_v36 = vpop.permute.xlu1 %110 }
  0x9e   :  { %vm115_vm5 = vcmp.eq.s32.totalorder %v111_v36, 1 }
  0x9f   :  { %v129_v41 = vsel %vm115_vm5, %v2617_v38, %v2618_v39 }
  0xa1   :  { %v114_v37 = vpop.permute.xlu1 %113 }
  0xa2   :  { %vm116_vm4 = vcmp.eq.s32.totalorder %v114_v37, 1 }
  0xa3   :  { %v130_v40 = vsel %vm116_vm4, %v2617_v38, %v2618_v39 }
 0x167   :  { %v2847_v42 = vpop.f32.mrb[0].mxu0 }
 0x168   :  { %v203_v44 = vadd.f32 %v2847_v42, %v130_v40  ;;  %v197_v45 = vpop.f32.mrb[1].mxu0 }
 0x169   :  { %v198_v47 = vadd.f32 %v197_v45, %v129_v41 }
 0x16a   :  { %v209_v48 = vadd.f32 %v207_v43, %v203_v44 }
 0x16b   :  { %v208_v49 = vadd.f32 %v206_v46, %v198_v47 }
 0x16c   :  { %v216_v50 = vsel %vm212_vm6, %v209_v48, 0.0 }
 0x16d   :  { %217 = vadd.xlane.f32.xlu1 %v216_v50  ;;  %v213_v51 = vsel %vm212_vm6, %v208_v49, 0.0 }
 0x16e   :  { %214 = vadd.xlane.f32.xlu0 %v213_v51 }
 0x1fa   :  { %v218_v52 = vpop.xlane.xlu1 %217 }
 0x1fb   :  { %v221_v53 = vmul.f32 0.03125, %v218_v52  ;;  %v215_v54 = vpop.xlane.xlu0 %214 }
 0x1fc   :  { %v220_v55 = vmul.f32 0.03125, %v215_v54 }
 0x1fd   :  { %v223_v56 = vsub.f32 %v209_v48, %v221_v53 }
 0x1fe   :  { %v222_v57 = vsub.f32 %v208_v49, %v220_v55 }
 0x1ff   :  { %v225_v60 = vmul.f32 %v223_v56, %v223_v56 }
 0x200   :  { %v224_v58 = vmul.f32 %v222_v57, %v222_v57 }
 0x201   :  { %v229_v61 = vsel %vm212_vm6, %v225_v60, 0.0 }
 0x202   :  { %v226_v59 = vsel %vm212_vm6, %v224_v58, 0.0 }
 0x203   :  { %227 = vadd.xlane.f32.xlu0 %v226_v59 }
 0x207   :  { %230 = vadd.xlane.f32.xlu0 %v229_v61 }
 0x290   :  { %v228_v4 = vpop.xlane.xlu0 %227 }
 0x291   :  { %v232_v5 = vmul.f32 0.03125, %v228_v4  ;;  %v775_v4 = vsub.s32 1, %v3488_v28 }
 0x293   :  { %v234_v6 = vadd.f32 1e-12, %v232_v5  ;;  %v3535_v5 = vrot.slane %v3491_v32, %v775_v4 }
 0x294   :  { %v231_v7 = vpop.xlane.xlu0 %230 }
 0x295   :  { %3157 = vrsqrt.f32 %v234_v6  ;;  %v233_v8 = vmul.f32 0.03125, %v231_v7 }
 0x297   :  { %v235_v9 = vadd.f32 1e-12, %v233_v8 }
 0x299   :  { %3159 = vrsqrt.f32 %v235_v9 }
 0x29f   :  { %v3158_v10 = vpop.eup %3157 }
 0x2a0   :  { %v238_v12 = vmul.f32 %v3158_v10, %v222_v57 }
 0x2a2   :  { %v246_v14 = vmul.f32 %v2621_v11, %v238_v12 }
 0x2a3   :  { %v3160_v15 = vpop.eup %3159 }
 0x2a4   :  { %v239_v16 = vmul.f32 %v3160_v15, %v223_v56  ;;  %v3457_v17 = vadd.f32 %v2622_v13, %v246_v14 }
 0x2a6   :  { %v247_v18 = vmul.f32 %v2621_v11, %v239_v16  ;;  %2856 = vmatprep.mubr.msk.f32.mxu1 %vm212_vm6, %v3457_v17 }
 0x2a8   :  { %v3461_v19 = vadd.f32 %v2622_v13, %v247_v18 }
 0x2aa   :  { %2857 = vmatmul.mubr.msk.f32.vlgmr.msra.gmra.mrb[0].mxu1 %vm212_vm6, %v3461_v19 }
 0x2ab   :  { %2861 = vmatprep.mubr.msk.f32.mxu1 %vm3244_vm7, %v3243_v20 }
 0x37d   :  { %v2858_v22 = vpop.f32.mrb[0].mxu1 }
 0x37e   :  { %v3474_v23 = vadd.f32 %v2858_v22, %v2623_v21  ;;  %v342_v24 = vpop.f32.mrb[1].mxu1 }
 0x37f   :  { %v343_v25 = vadd.f32 %v2623_v21, %v342_v24 }
 0x381   :  { %352 = vrot.lane.b32.xlu1 %v343_v25, %s3245_s25 }
 0x385   :  { %525 = vrot.lane.b32.xlu1 %v343_v25, %s3246_s27 }
 0x389   :  { %523 = vrot.lane.b32.xlu1 %v343_v25, %s3247_s3 }
 0x3f3   :  { %v353_v26 = vpop.permute.xlu1 %352 }
 0x3f4   :  { %2860 = vmatpush3.xpose.msk.msra.mxu1 %vm354_vm8, %v353_v26 }
 0x3f5   :  { %2864 = vmatprep.subr.mxu1 %v3243_v20 }
 0x3f7   :  { %2862 = vmatmul.mubr.msk.f32.vlgmr.msra.gmra.mrb[2].mxu1 %vm354_vm8, %v343_v25  ;;  %v526_v46 = vpop.permute.xlu1 %525 }
 0x3f8   :  { %2866 = vmatprep.mubr.msk.f32.mxu1 %vm3244_vm7, %v3243_v20 }
 0x3fb   :  { %v524_v48 = vpop.permute.xlu1 %523 }
 0x4ca   :  { %v425_v34 = vpop.f32.mrb[2].mxu1 }
 0x4cb   :  { %v429_v35 = vmul.f32 0.25, %v425_v34  ;;  %v2863_v36 = vpop.f32.mrb[3].mxu1 }
 0x4cd   :  { %v434_v37 = vadd.f32 %v3494_v33, %v429_v35 }
 0x4cf   :  { %v436_v38 = vsel %vm435_vm9, %v434_v37, -inf }
 0x4d0   :  { %437 = vmax.xlane.f32.xlu0 %v436_v38 }
 0x55d   :  { %v438_v39 = vpop.xlane.xlu0 %437 }
 0x55e   :  { %v439_v31 = vsub.f32 %v434_v37, %v438_v39 }
 0x560   :  { %v440_v40 = vmul.f32 1.442695, %v439_v31 }
 0x562   :  { %3161 = vpow2.f32 %v440_v40 }
 0x56c   :  { %v3162_v41 = vpop.eup %3161 }
 0x56d   :  { %v442_v42 = vsel %vm435_vm9, %v3162_v41, 0.0 }
 0x56e   :  { %443 = vadd.xlane.f32.xlu0 %v442_v42 }
 0x584   :  { %447 = vrot.lane.b32.xlu0 %v343_v25, %s3248_s29 }
 0x5fb   :  { %v444_v43 = vpop.xlane.xlu0 %443 }
 0x5fc   :  { %3163 = vrcp.f32 %v444_v43  ;;  %v1038_v43 = vld [vmem:[%s3851_s11 + $0x8] sm:$0xff] }
 0x5ff   :  { %v448_v44 = vpop.permute.xlu0 %447 }
 0x600   :  { %2865 = vmatpush3.msra.mxu1 %v448_v44  ;;  %v1039_v44 = vld [vmem:[%s3851_s11 + $0x10] sm:$0xff] }
 0x601   :  { %2869 = vmatprep.subr.mxu1 %v3243_v20 }
 0x606   :  { %v3164_v45 = vpop.eup %3163 }
 0x607   :  { %v446_v47 = vmul.f32 %v3164_v45, %v3162_v41 }
 0x609   :  { %2867 = vmatmul.mubr.msk.f32.vlgmr.msra.gmra.mrb[4].mxu1 %vm435_vm9, %v446_v47 }
 0x60a   :  { %2870 = vmatpush3.xpose.msk.msra.mxu1 %vm354_vm8, %v526_v46  ;;  %2871 = vmatprep.mubr.msk.f32.mxu1 %vm3244_vm7, %v3243_v20  ;;  %v1040_v46 = vld [vmem:[%s3851_s11 + $0x18] sm:$0xff] }
 0x60b   :  { %2874 = vmatprep.subr.mxu1 %v3243_v20  ;;  %v3076_v47 = vpack.c.bf16 %v1040_v46, %v1039_v44  ;;  %v1292_v44 = vld [vmem:[%s3857_s17 + $0x38] sm:$0xff]  ;;  %v2643_v46 = vld [vmem:[%s3880_s5] ss:$0 sm:$0xff] }
 0x60d   :  { %2872 = vmatmul.mubr.msk.f32.vlgmr.msra.gmra.mrb[6].mxu1 %vm354_vm8, %v524_v48 }
 0x60e   :  { %2876 = vmatprep.mubr.msk.f32.mxu1 %vm3244_vm7, %v3243_v20 }
 0x6dc   :  { %v3509_v49 = vpop.f32.mrb[4].mxu1 }
 0x6dd   :  { %v2868_v50 = vpop.f32.mrb[5].mxu1 }
 0x6e0   :  { %v597_v51 = vpop.f32.mrb[6].mxu1 }
 0x6e1   :  { %v601_v52 = vmul.f32 0.25, %v597_v51  ;;  %v2873_v53 = vpop.f32.mrb[7].mxu1 }
 0x6e3   :  { %v602_v54 = vadd.f32 %v601_v52, %v3494_v33 }
 0x6e5   :  { %v603_v55 = vsel %vm435_vm9, %v602_v54, -inf }
 0x6e6   :  { %604 = vmax.xlane.f32.xlu1 %v603_v55 }
 0x6f7   :  { %614 = vrot.lane.b32.xlu1 %v343_v25, %s3249_s0 }
 0x6fb   :  { %867 = vrot.lane.b32.xlu1 %v3474_v23, %s3246_s27 }
 0x6ff   :  { %865 = vrot.lane.b32.xlu1 %v3474_v23, %s3247_s3 }
 0x773   :  { %v605_v56 = vpop.xlane.xlu1 %604 }
 0x774   :  { %v606_v57 = vsub.f32 %v602_v54, %v605_v56  ;;  %v2638_v54 = vld [vmem:[%s3852_s12] ss:$0 sm:$0xff] }
 0x776   :  { %v607_v58 = vmul.f32 1.442695, %v606_v57 }
 0x777   :  { %v615_v59 = vpop.permute.xlu1 %614 }
 0x778   :  { %3165 = vpow2.f32 %v607_v58  ;;  %2875 = vmatpush3.msra.mxu1 %v615_v59 }
 0x779   :  { %2879 = vmatprep.subr.mxu1 %v3243_v20 }
 0x77b   :  { %v868_v60 = vpop.permute.xlu1 %867 }
 0x77c   :  { %2890 = vmatpush3.xpose.msk.msra.mxu0 %vm354_vm8, %v868_v60 }
 0x77f   :  { %v866_v61 = vpop.permute.xlu1 %865 }
 0x780   :  { %2892 = vmatmul.mubr.msk.f32.vlgmr.msra.gmra.mrb[2].mxu0 %vm354_vm8, %v866_v61 }
 0x782   :  { %v3166_v62 = vpop.eup %3165 }
 0x783   :  { %v609_v63 = vsel %vm435_vm9, %v3166_v62, 0.0 }
 0x784   :  { %610 = vadd.xlane.f32.xlu0 %v609_v63 }
 0x79a   :  { %696 = vrot.lane.b32.xlu0 %v3474_v23, %s3245_s25 }
 0x811   :  { %v611_v0 = vpop.xlane.xlu0 %610 }
 0x812   :  { %3167 = vrcp.f32 %v611_v0 }
 0x815   :  { %v697_v3 = vpop.permute.xlu0 %696 }
 0x81c   :  { %v3168_v1 = vpop.eup %3167 }
 0x81d   :  { %v613_v2 = vmul.f32 %v3168_v1, %v3166_v62 }
 0x81f   :  { %2877 = vmatmul.mubr.msk.f32.vlgmr.msra.gmra.mrb[8].mxu1 %vm435_vm9, %v613_v2 }
 0x820   :  { %2880 = vmatpush3.xpose.msk.msra.mxu1 %vm354_vm8, %v697_v3  ;;  %2881 = vmatprep.mubr.msk.f32.mxu1 %vm3244_vm7, %v3243_v20 }
 0x821   :  { %2884 = vmatprep.subr.mxu1 %v3243_v20 }
 0x823   :  { %2882 = vmatmul.mubr.msk.f32.vlgmr.msra.gmra.mrb[10].mxu1 %vm354_vm8, %v3474_v23 }
 0x824   :  { %2886 = vmatprep.mubr.msk.f32.mxu1 %vm3244_vm7, %v3243_v20 }
 0x853   :  { %v939_v6 = vpop.f32.mrb[2].mxu0 }
 0x854   :  { %v943_v7 = vmul.f32 0.25, %v939_v6  ;;  %v2893_v8 = vpop.f32.mrb[3].mxu0 }
 0x856   :  { %v944_v9 = vadd.f32 %v943_v7, %v3535_v5 }
 0x858   :  { %v945_v10 = vsel %vm435_vm9, %v944_v9, -inf }
 0x859   :  { %946 = vmax.xlane.f32.xlu1 %v945_v10 }
 0x86a   :  { %789 = vrot.lane.b32.xlu1 %v3474_v23, %s3248_s29 }
 0x8e6   :  { %v947_v11 = vpop.xlane.xlu1 %946 }
 0x8e7   :  { %v948_v12 = vsub.f32 %v944_v9, %v947_v11  ;;  %v1176_v9 = vld [vmem:[%s3855_s15 + $0x8] sm:$0xff]  ;;  %v1177_v11 = vld [vmem:[%s3855_s15 + $0x10] sm:$0xff] }
 0x8e9   :  { %v949_v14 = vmul.f32 1.442695, %v948_v12  ;;  %v1178_v12 = vld [vmem:[%s3855_s15 + $0x18] sm:$0xff] }
 0x8ea   :  { %v790_v13 = vpop.permute.xlu1 %789 }
 0x8eb   :  { %2885 = vmatpush3.msra.mxu1 %v790_v13  ;;  %3169 = vpow2.f32 %v949_v14  ;;  %v3084_v13 = vpack.c.bf16 %v1178_v12, %v1177_v11 }
 0x8ec   :  { %2894 = vmatprep.subr.mxu1 %v3243_v20 }
 0x8f2   :  { %v686_v15 = vpop.f32.mrb[8].mxu1 }
 0x8f3   :  { %691 = vrot.lane.b32.xlu1 %v686_v15, %s3250_s4  ;;  %v2878_v16 = vpop.f32.mrb[9].mxu1 }
 0x8f5   :  { %v3170_v26 = vpop.eup %3169 }
 0x8f6   :  { %v768_v18 = vpop.f32.mrb[10].mxu1  ;;  %v951_v27 = vsel %vm435_vm9, %v3170_v26, 0.0 }
 0x8f7   :  { %v772_v21 = vmul.f32 0.25, %v768_v18  ;;  %v2883_v22 = vpop.f32.mrb[11].mxu1 }
 0x8f9   :  { %v777_v24 = vadd.f32 %v3535_v5, %v772_v21 }
 0x8fb   :  { %v778_v25 = vsel %vm435_vm9, %v777_v24, -inf }
 0x8fc   :  { %779 = vmax.xlane.f32.xlu0 %v778_v25  ;;  %v2641_v25 = vld [vmem:[%s3853_s13] ss:$0 sm:$0xff] }
 0x900   :  { %952 = vadd.xlane.f32.xlu0 %v951_v27  ;;  %v2642_v27 = vld [vmem:[%s3854_s14] ss:$0 sm:$0xff] }
 0x965   :  { %v692_v40 = vpop.permute.xlu1 %691 }
 0x966   :  { %v694_v42 = vsel %vm354_vm8, %v3509_v49, %v692_v40 }
 0x989   :  { %v780_v28 = vpop.xlane.xlu0 %779 }
 0x98a   :  { %v781_v29 = vsub.f32 %v777_v24, %v780_v28 }
 0x98c   :  { %v782_v30 = vmul.f32 1.442695, %v781_v29 }
 0x98d   :  { %v953_v35 = vpop.xlane.xlu0 %952 }
 0x98e   :  { %3171 = vpow2.f32 %v782_v30 }
 0x998   :  { %v3172_v32 = vpop.eup %3171 }
 0x999   :  { %v784_v34 = vsel %vm435_vm9, %v3172_v32, 0.0 }
 0x99a   :  { %785 = vadd.xlane.f32.xlu0 %v784_v34 }
 0x9b0   :  { %956 = vrot.lane.b32.xlu0 %v3474_v23, %s3249_s0  ;;  %v1037_v23 = vld [vmem:[%s3851_s11] sm:$0xff] }
 0x9b1   :  { %v3072_v45 = vpack.c.bf16 %v1038_v43, %v1037_v23  ;;  %v1291_v43 = vld [vmem:[%s3857_s17 + $0x30] sm:$0xff] }
 0xa27   :  { %v786_v36 = vpop.xlane.xlu0 %785 }
 0xa28   :  { %3173 = vrcp.f32 %v786_v36  ;;  %v1285_v36 = vld [vmem:[%s3857_s17] sm:$0xff] }
 0xa29   :  { %3175 = vrcp.f32 %v953_v35 }
 0xa2b   :  { %v957_v31 = vpop.permute.xlu0 %956 }
 0xa32   :  { %v3174_v37 = vpop.eup %3173 }
 0xa33   :  { %v788_v38 = vmul.f32 %v3174_v37, %v3172_v32  ;;  %v3176_v39 = vpop.eup %3175  ;;  %v1286_v37 = vld [vmem:[%s3857_s17 + $0x8] sm:$0xff] }
 0xa34   :  { %v955_v41 = vmul.f32 %v3176_v39, %v3170_v26  ;;  %v1287_v39 = vld [vmem:[%s3857_s17 + $0x10] sm:$0xff] }
 0xa35   :  { %2887 = vmatmul.mubr.msk.f32.vlgmr.msra.gmra.mrb[12].mxu1 %vm435_vm9, %v788_v38  ;;  %v3088_v38 = vpack.c.bf16 %v1286_v37, %v1285_v36 }
 0xa36   :  { %2895 = vmatpush3.msra.mxu1 %v957_v31  ;;  %2896 = vmatprep.mubr.msk.f32.mxu1 %vm3244_vm7, %v3243_v20  ;;  %v1288_v31 = vld [vmem:[%s3857_s17 + $0x18] sm:$0xff] }
 0xa37   :  { %3073 = vmatprep.subr.bf16.mxu1 %v3072_v45  ;;  %3089 = vmatprep.subr.bf16.mxu0 %v3088_v38  ;;  %v3092_v40 = vpack.c.bf16 %v1288_v31, %v1287_v39 }
 0xa38   :  { %3091 = vmatpush3.bf16.msra.mxu0 %v3088_v38 }
 0xa39   :  { %2897 = vmatmul.mubr.msk.f32.vlgmr.msra.gmra.mrb[14].mxu1 %vm435_vm9, %v955_v41  ;;  %3093 = vmatprep.subr.bf16.mxu0 %v3092_v40  ;;  %v1289_v41 = vld [vmem:[%s3857_s17 + $0x20] sm:$0xff] }
 0xa3a   :  { %2907 = vmatprep.mubr.msk.f32.mxu1 %vm212_vm6, %v694_v42  ;;  %3075 = vmatpush3.bf16.msra.mxu1 %v3072_v45  ;;  %v1290_v42 = vld [vmem:[%s3857_s17 + $0x28] sm:$0xff]  ;;  %v3100_v45 = vpack.c.bf16 %v1292_v44, %v1291_v43  ;;  %v2650_v44 = vld [vmem:[%s3860_s20] ss:$0 sm:$0xff] }
 0xa3b   :  { %3077 = vmatprep.subr.bf16.mxu1 %v3076_v47  ;;  %v3096_v23 = vpack.c.bf16 %v1290_v42, %v1289_v41  ;;  %v2649_v41 = vld [vmem:[%s3859_s19] ss:$0 sm:$0xff] }
 0xa3c   :  { %3095 = vmatpush3.bf16.msra.mxu0 %v3092_v40 }
 0xa3d   :  { %3097 = vmatprep.subr.bf16.mxu0 %v3096_v23 }
 0xa3e   :  { %3079 = vmatpush3.bf16.msra.mxu1 %v3076_v47 }
 0xa40   :  { %3099 = vmatpush3.bf16.msra.mxu0 %v3096_v23 }
 0xa41   :  { %3101 = vmatprep.subr.bf16.mxu0 %v3100_v45 }
 0xa44   :  { %3103 = vmatpush3.bf16.msra.mxu0 %v3100_v45 }
 0xa45   :  { %2961 = vmatprep.subr.mxu0 %v3243_v20 }
 0xb08   :  { %v861_v48 = vpop.f32.mrb[12].mxu1 }
 0xb09   :  { %v2888_v49 = vpop.f32.mrb[13].mxu1 }
 0xb0c   :  { %v1028_v50 = vpop.f32.mrb[14].mxu1 }
 0xb0d   :  { %1033 = vrot.lane.b32.xlu1 %v1028_v50, %s3250_s4  ;;  %v2898_v51 = vpop.f32.mrb[15].mxu1 }
 0xb7f   :  { %v1034_v52 = vpop.permute.xlu1 %1033 }
 0xb80   :  { %v1036_v53 = vsel %vm354_vm8, %v861_v48, %v1034_v52 }
 0xb81   :  { %2908 = vmatmul.mubr.msk.f32.vlgmr.msra.gmra.mrb[16].mxu1 %vm212_vm6, %v1036_v53 }
 0xc54   :  { %v2909_v55 = vpop.f32.mrb[16].mxu1 }
 0xc55   :  { %v1126_v56 = vadd.f32 %v2909_v55, %v2638_v54  ;;  %v1120_v57 = vpop.f32.mrb[17].mxu1 }
 0xc56   :  { %v1121_v58 = vadd.f32 %v2638_v54, %v1120_v57 }
 0xc57   :  { %v1130_v59 = vadd.f32 %v1126_v56, %v3461_v19 }
 0xc58   :  { %v1129_v60 = vadd.f32 %v1121_v58, %v3457_v17  ;;  %v1175_v17 = vld [vmem:[%s3855_s15] sm:$0xff] }
 0xc59   :  { %v1136_v61 = vsel %vm212_vm6, %v1130_v59, 0.0  ;;  %v3080_v10 = vpack.c.bf16 %v1176_v9, %v1175_v17 }
 0xc5a   :  { %1137 = vadd.xlane.f32.xlu1 %v1136_v61  ;;  %v1133_v62 = vsel %vm212_vm6, %v1129_v60, 0.0 }
 0xc5b   :  { %1134 = vadd.xlane.f32.xlu0 %v1133_v62  ;;  %3081 = vmatprep.subr.bf16.mxu1 %v3080_v10 }
 0xc5c   :  { %3083 = vmatpush3.bf16.msra.mxu1 %v3080_v10 }
 0xc5d   :  { %3085 = vmatprep.subr.bf16.mxu1 %v3084_v13 }
 0xc60   :  { %3087 = vmatpush3.bf16.msra.mxu1 %v3084_v13 }
 0xce7   :  { %v1138_v63 = vpop.xlane.xlu1 %1137 }
 0xce8   :  { %v1140_v0 = vmul.f32 0.03125, %v1138_v63  ;;  %v1135_v1 = vpop.xlane.xlu0 %1134 }
 0xce9   :  { %v1139_v2 = vmul.f32 0.03125, %v1135_v1 }
 0xcea   :  { %v1142_v3 = vsub.f32 %v1130_v59, %v1140_v0 }
 0xceb   :  { %v1141_v4 = vsub.f32 %v1129_v60, %v1139_v2 }
 0xcec   :  { %v1144_v8 = vmul.f32 %v1142_v3, %v1142_v3 }
 0xced   :  { %v1143_v6 = vmul.f32 %v1141_v4, %v1141_v4 }
 0xcee   :  { %v1148_v19 = vsel %vm212_vm6, %v1144_v8, 0.0 }
 0xcef   :  { %v1145_v7 = vsel %vm212_vm6, %v1143_v6, 0.0  ;;  %v2646_v6 = vld [vmem:[%s3858_s18] ss:$0 sm:$0xff] }
 0xcf0   :  { %1146 = vadd.xlane.f32.xlu0 %v1145_v7 }
 0xcf4   :  { %1149 = vadd.xlane.f32.xlu0 %v1148_v19 }
 0xd7d   :  { %v1147_v14 = vpop.xlane.xlu0 %1146 }
 0xd7e   :  { %v1151_v15 = vmul.f32 0.03125, %v1147_v14 }
 0xd80   :  { %v1153_v16 = vadd.f32 1e-12, %v1151_v15 }
 0xd81   :  { %v1150_v18 = vpop.xlane.xlu0 %1149 }
 0xd82   :  { %3177 = vrsqrt.f32 %v1153_v16  ;;  %v1152_v21 = vmul.f32 0.03125, %v1150_v18 }
 0xd84   :  { %v1154_v22 = vadd.f32 1e-12, %v1152_v21 }
 0xd86   :  { %3179 = vrsqrt.f32 %v1154_v22 }
 0xd8c   :  { %v3178_v24 = vpop.eup %3177 }
 0xd8d   :  { %v1157_v26 = vmul.f32 %v3178_v24, %v1141_v4 }
 0xd8f   :  { %v1165_v28 = vmul.f32 %v2641_v25, %v1157_v26 }
 0xd90   :  { %v3180_v29 = vpop.eup %3179 }
 0xd91   :  { %v1158_v30 = vmul.f32 %v3180_v29, %v1142_v3  ;;  %v1173_v32 = vadd.f32 %v2642_v27, %v1165_v28  ;;  %v2652_v28 = vld [vmem:[%s3849_s9 + $0x28] sm:$0xff] }
 0xd93   :  { %v1166_v34 = vmul.f32 %v2641_v25, %v1158_v30  ;;  %2918 = vmatprep.mubr.msk.f32.mxu1 %vm212_vm6, %v1173_v32  ;;  %v2653_v30 = vld [vmem:[%s3849_s9 + $0x30] sm:$0xff] }
 0xd95   :  { %v1174_v35 = vadd.f32 %v2642_v27, %v1166_v34  ;;  %v2651_v27 = vld [vmem:[%s3849_s9 + $0x20] sm:$0xff] }
 0xd96   :  { %v3104_v29 = vpack.c.bf16 %v2652_v28, %v2651_v27 }
 0xd97   :  { %2919 = vmatmul.mubr.msk.f32.vlgmr.msra.gmra.mrb[18].mxu1 %vm212_vm6, %v1174_v35 }
 0xd98   :  { %3105 = vmatprep.subr.bf16.mxu1 %v3104_v29 }
 0xd99   :  { %3107 = vmatpush3.bf16.msra.mxu1 %v3104_v29 }
 0xe6a   :  { %v2920_v47 = vpop.f32.mrb[18].mxu1 }
 0xe6b   :  { %v1264_v48 = vadd.f32 %v2920_v47, %v2643_v46  ;;  %v1258_v49 = vpop.f32.mrb[19].mxu1 }
 0xe6c   :  { %v1259_v50 = vadd.f32 %v2643_v46, %v1258_v49  ;;  %v2656_v49 = vld [vmem:[%s3850_s10 + $0x1] ss:$0 sm:$0xff] }
 0xe6d   :  { %v1268_v51 = vmul.f32 %v1264_v48, %v1264_v48 }
 0xe6e   :  { %v1267_v52 = vmul.f32 %v1259_v50, %v1259_v50 }
 0xe6f   :  { %v1270_v53 = vmul.f32 %v1268_v51, %v1264_v48 }
 0xe70   :  { %v1269_v54 = vmul.f32 %v1267_v52, %v1259_v50 }
 0xe71   :  { %v1272_v55 = vmul.f32 0.044715, %v1270_v53 }
 0xe72   :  { %v1271_v56 = vmul.f32 0.044715, %v1269_v54 }
 0xe73   :  { %v1274_v57 = vadd.f32 %v1272_v55, %v1264_v48 }
 0xe74   :  { %v1273_v58 = vadd.f32 %v1271_v56, %v1259_v50 }
 0xe75   :  { %v1276_v59 = vmul.f32 0.7978846, %v1274_v57 }
 0xe76   :  { %v1275_v60 = vmul.f32 0.7978846, %v1273_v58 }
 0xe77   :  { %3181 = vtanh.f32 %v1276_v59 }
 0xe78   :  { %3183 = vtanh.f32 %v1275_v60 }
 0xe81   :  { %v3182_v61 = vpop.eup %3181 }
 0xe82   :  { %v3184_v62 = vpop.eup %3183  ;;  %v1280_v63 = vadd.f32 1.0, %v3182_v61 }
 0xe83   :  { %v1279_v0 = vadd.f32 1.0, %v3184_v62 }
 0xe84   :  { %v1282_v1 = vmul.f32 0.5, %v1280_v63 }
 0xe85   :  { %v1281_v2 = vmul.f32 0.5, %v1279_v0 }
 0xe86   :  { %v1284_v4 = vmul.f32 %v1282_v1, %v1264_v48 }
 0xe87   :  { %v1283_v3 = vmul.f32 %v1281_v2, %v1259_v50 }
 0xe89   :  { %2937 = vmatprep.mubr.msk.f32.mxu0 %vm1300_vm10, %v1283_v3 }
 0xe8a   :  { %2938 = vmatmul.mubr.msk.f32.vlgmr.msra.gmra.mrb[4].mxu0 %vm1300_vm10, %v1284_v4 }
 0xe8b   :  { %2963 = vmatprep.mubr.msk.f32.mxu0 %vm3244_vm7, %v3243_v20 }
 0xf5d   :  { %v2939_v7 = vpop.f32.mrb[4].mxu0 }
 0xf5e   :  { %v1379_v8 = vadd.f32 %v2939_v7, %v2646_v6  ;;  %v1373_v19 = vpop.f32.mrb[5].mxu0 }
 0xf5f   :  { %v1374_v17 = vadd.f32 %v2646_v6, %v1373_v19 }
 0xf60   :  { %v1383_v9 = vadd.f32 %v1379_v8, %v1174_v35 }
 0xf61   :  { %v1382_v10 = vadd.f32 %v1374_v17, %v1173_v32  ;;  %v2654_v32 = vld [vmem:[%s3849_s9 + $0x38] sm:$0xff]  ;;  %s3251_s9 = smov [#allocation2]  }
 0xf62   :  { %v1389_v11 = vsel %vm212_vm6, %v1383_v9, 0.0  ;;  %v3108_v34 = vpack.c.bf16 %v2654_v32, %v2653_v30  ;;  %s2607_s22 = sshll.u32 %s3251_s9, 4  ;;  %s2608_s22 = int_to_ptr.vmem [resolvable:$true] %s2607_s22 }
 0xf63   :  { %1390 = vadd.xlane.f32.xlu0 %v1389_v11  ;;  %v1386_v12 = vsel %vm212_vm6, %v1382_v10, 0.0  ;;  %s3217_s16 = scalar_lea.vmem %s2608_s22, 32  ;;  %p3222_p1 = scmp.lt.s32.totalorder %s2608_s22, %s2608_s22 }
 0xf64   :  { %1387 = vadd.xlane.f32.xlu1 %v1386_v12  ;;  %3109 = vmatprep.subr.bf16.mxu1 %v3108_v34  ;;  %p3218_p0 = scmp.ne.s32.totalorder %s2608_s22, %s3217_s16  ;;  %p3223_p2 = scmp.lt.s32.totalorder %s3217_s16, %s3217_s16 }
 0xf65   :  { %3111 = vmatpush3.bf16.msra.mxu1 %v3108_v34 }
 0xf66   :  { %2951 = vmatprep.subr.mxu1 %v3243_v20  ;;  %p3224_p3 = por %p3223_p2, %p3222_p1 }
 0xf68   :  { %p3225_p4 = pnand %p3224_p3, %p3218_p0 }
 0xff0   :  { %v1391_v13 = vpop.xlane.xlu0 %1390 }
 0xff1   :  { %v1393_v14 = vmul.f32 0.03125, %v1391_v13  ;;  %v1388_v15 = vpop.xlane.xlu1 %1387 }
 0xff2   :  { %v1392_v16 = vmul.f32 0.03125, %v1388_v15 }
 0xff3   :  { %v1395_v18 = vsub.f32 %v1383_v9, %v1393_v14 }
 0xff4   :  { %v1394_v21 = vsub.f32 %v1382_v10, %v1392_v16 }
 0xff5   :  { %v1397_v22 = vmul.f32 %v1395_v18, %v1395_v18 }
 0xff6   :  { %v1396_v24 = vmul.f32 %v1394_v21, %v1394_v21 }
 0xff7   :  { %v1401_v25 = vsel %vm212_vm6, %v1397_v22, 0.0 }
 0xff8   :  { %1402 = vadd.xlane.f32.xlu0 %v1401_v25  ;;  %v1398_v26 = vsel %vm212_vm6, %v1396_v24, 0.0 }
 0xff9   :  { %1399 = vadd.xlane.f32.xlu1 %v1398_v26 }
0x1085   :  { %v1403_v35 = vpop.xlane.xlu0 %1402 }
0x1086   :  { %v1405_v36 = vmul.f32 0.03125, %v1403_v35  ;;  %v1400_v37 = vpop.xlane.xlu1 %1399 }
0x1087   :  { %v1404_v38 = vmul.f32 0.03125, %v1400_v37 }
0x1088   :  { %v1407_v39 = vadd.f32 1e-12, %v1405_v36 }
0x1089   :  { %v1406_v31 = vadd.f32 1e-12, %v1404_v38 }
0x108a   :  { %3185 = vrsqrt.f32 %v1407_v39 }
0x108b   :  { %3187 = vrsqrt.f32 %v1406_v31 }
0x1094   :  { %v3186_v40 = vpop.eup %3185 }
0x1095   :  { %v3188_v42 = vpop.eup %3187  ;;  %v1411_v23 = vmul.f32 %v3186_v40, %v1395_v18 }
0x1096   :  { %v1410_v43 = vmul.f32 %v3188_v42, %v1394_v21 }
0x1097   :  { %v1419_v45 = vmul.f32 %v2649_v41, %v1411_v23 }
0x1098   :  { %v1418_v46 = vmul.f32 %v2649_v41, %v1410_v43 }
0x1099   :  { %v3660_v48 = vadd.f32 %v2650_v44, %v1419_v45 }
0x109a   :  { %v3658_v47 = vadd.f32 %v2650_v44, %v1418_v46 }
0x109c   :  { %2948 = vmatprep.mubr.msk.f32.mxu1 %vm212_vm6, %v3658_v47 }
0x109d   :  { %2949 = vmatmul.mubr.msk.f32.vlgmr.msra.gmra.mrb[20].mxu1 %vm212_vm6, %v3660_v48 }
0x109e   :  { %2953 = vmatprep.mubr.msk.f32.mxu1 %vm3244_vm7, %v3243_v20 }
0x1170   :  { %v2950_v50 = vpop.f32.mrb[20].mxu1 }
0x1171   :  { %v1513_v51 = vpop.f32.mrb[21].mxu1  ;;  %v3677_v53 = vadd.f32 %v2950_v50, %v2656_v49 }
0x1172   :  { %v3671_v52 = vadd.f32 %v2656_v49, %v1513_v51 }
0x1174   :  { %1690 = vrot.lane.b32.xlu0 %v3671_v52, %s3246_s27  ;;  %1523 = vrot.lane.b32.xlu1 %v3671_v52, %s3245_s25 }
0x1178   :  { %2028 = vrot.lane.b32.xlu0 %v3677_v53, %s3246_s27  ;;  %1688 = vrot.lane.b32.xlu1 %v3671_v52, %s3247_s3 }
0x117c   :  { %1861 = vrot.lane.b32.xlu1 %v3677_v53, %s3245_s25 }
0x1180   :  { %2026 = vrot.lane.b32.xlu1 %v3677_v53, %s3247_s3 }
0x11e6   :  { %v1691_v54 = vpop.permute.xlu0 %1690  ;;  %v1524_v55 = vpop.permute.xlu1 %1523 }
0x11e7   :  { %2952 = vmatpush3.xpose.msk.msra.mxu1 %vm354_vm8, %v1524_v55  ;;  %2962 = vmatpush3.xpose.msk.msra.mxu0 %vm354_vm8, %v1691_v54  ;;  %v2671_v55 = vld [vmem:[%s3851_s11 + $0x20] sm:$0xff] }
0x11e8   :  { %2971 = vmatprep.subr.mxu0 %v3243_v20  ;;  %2956 = vmatprep.subr.mxu1 %v3243_v20 }
0x11ea   :  { %2954 = vmatmul.mubr.msk.f32.vlgmr.msra.gmra.mrb[22].mxu1 %vm354_vm8, %v3671_v52  ;;  %v1689_v56 = vpop.permute.xlu1 %1688  ;;  %v2029_v58 = vpop.permute.xlu0 %2028 }
0x11eb   :  { %2964 = vmatmul.mubr.msk.f32.vlgmr.msra.gmra.mrb[6].mxu0 %vm354_vm8, %v1689_v56  ;;  %2958 = vmatprep.mubr.msk.f32.mxu1 %vm3244_vm7, %v3243_v20  ;;  %v2672_v56 = vld [vmem:[%s3851_s11 + $0x28] sm:$0xff] }
0x11ec   :  { %2973 = vmatprep.mubr.msk.f32.mxu0 %vm3244_vm7, %v3243_v20 }
0x11ee   :  { %v1862_v57 = vpop.permute.xlu1 %1861 }
0x11ef   :  { %2972 = vmatpush3.xpose.msk.msra.mxu0 %vm354_vm8, %v1862_v57  ;;  %v3112_v57 = vpack.c.bf16 %v2672_v56, %v2671_v55  ;;  %v2695_v56 = vld [vmem:[%s3857_s17 + $0x60] sm:$0xff] }
0x11f0   :  { %2981 = vmatprep.subr.mxu0 %v3243_v20 }
0x11f2   :  { %2974 = vmatmul.mubr.msk.f32.vlgmr.msra.gmra.mrb[8].mxu0 %vm354_vm8, %v3677_v53  ;;  %v2027_v59 = vpop.permute.xlu1 %2026 }
0x11f3   :  { %2982 = vmatpush3.xpose.msk.msra.mxu0 %vm354_vm8, %v2029_v58  ;;  %2983 = vmatprep.mubr.msk.f32.mxu0 %vm3244_vm7, %v3243_v20  ;;  %v2673_v58 = vld [vmem:[%s3851_s11 + $0x30] sm:$0xff] }
0x11f4   :  { %3113 = vmatprep.subr.bf16.mxu0 %v3112_v57 }
0x11f6   :  { %2984 = vmatmul.mubr.msk.f32.vlgmr.msra.gmra.mrb[10].mxu0 %vm354_vm8, %v2027_v59 }
0x11f7   :  { %3115 = vmatpush3.bf16.msra.mxu0 %v3112_v57  ;;  %v2696_v57 = vld [vmem:[%s3857_s17 + $0x68] sm:$0xff] }
0x12bd   :  { %v1595_v60 = vpop.f32.mrb[22].mxu1 }
0x12be   :  { %v1599_v61 = vmul.f32 0.25, %v1595_v60  ;;  %v2955_v62 = vpop.f32.mrb[23].mxu1  ;;  %v1762_v63 = vpop.f32.mrb[6].mxu0 }
0x12bf   :  { %v1766_v0 = vmul.f32 0.25, %v1762_v63  ;;  %v2965_v1 = vpop.f32.mrb[7].mxu0 }
0x12c0   :  { %v1600_v2 = vadd.f32 %v1599_v61, %v3494_v33 }
0x12c1   :  { %v1767_v3 = vadd.f32 %v1766_v0, %v3494_v33 }
0x12c2   :  { %v1601_v4 = vsel %vm435_vm9, %v1600_v2, -inf }
0x12c3   :  { %1602 = vmax.xlane.f32.xlu0 %v1601_v4  ;;  %v1768_v6 = vsel %vm435_vm9, %v1767_v3, -inf }
0x12c4   :  { %1769 = vmax.xlane.f32.xlu1 %v1768_v6 }
0x12c5   :  { %v1933_v7 = vpop.f32.mrb[8].mxu0 }
0x12c6   :  { %v1937_v8 = vmul.f32 0.25, %v1933_v7  ;;  %v2975_v19 = vpop.f32.mrb[9].mxu0 }
0x12c7   :  { %v2676_v19 = vld [vmem:[%s3852_s12 + $0x1] ss:$0 sm:$0xff] }
0x12c8   :  { %v1938_v17 = vadd.f32 %v1937_v8, %v3535_v5 }
0x12c9   :  { %v2100_v9 = vpop.f32.mrb[10].mxu0 }
0x12ca   :  { %v2104_v10 = vmul.f32 0.25, %v2100_v9  ;;  %v2985_v11 = vpop.f32.mrb[11].mxu0  ;;  %v1939_v12 = vsel %vm435_vm9, %v1938_v17, -inf }
0x12cb   :  { %1940 = vmax.xlane.f32.xlu0 %v1939_v12 }
0x12cc   :  { %v2105_v13 = vadd.f32 %v2104_v10, %v3535_v5 }
0x12ce   :  { %v2106_v33 = vsel %vm435_vm9, %v2105_v13, -inf }
0x12cf   :  { %2107 = vmax.xlane.f32.xlu0 %v2106_v33 }
0x12d5   :  { %1612 = vrot.lane.b32.xlu1 %v3671_v52, %s3248_s29 }
0x1350   :  { %v1603_v14 = vpop.xlane.xlu0 %1602 }
0x1351   :  { %v1604_v15 = vsub.f32 %v1600_v2, %v1603_v14  ;;  %v1770_v16 = vpop.xlane.xlu1 %1769 }
0x1352   :  { %v1771_v18 = vsub.f32 %v1767_v3, %v1770_v16 }
0x1353   :  { %v1605_v21 = vmul.f32 1.442695, %v1604_v15 }
0x1354   :  { %v1772_v22 = vmul.f32 1.442695, %v1771_v18 }
0x1355   :  { %3189 = vpow2.f32 %v1605_v21  ;;  %v1613_v24 = vpop.permute.xlu1 %1612 }
0x1356   :  { %3191 = vpow2.f32 %v1772_v22  ;;  %2957 = vmatpush3.msra.mxu1 %v1613_v24 }
0x1357   :  { %2966 = vmatprep.subr.mxu1 %v3243_v20 }
0x1358   :  { %v1941_v25 = vpop.xlane.xlu0 %1940 }
0x1359   :  { %v1942_v5 = vsub.f32 %v1938_v17, %v1941_v25 }
0x135b   :  { %v1943_v26 = vmul.f32 1.442695, %v1942_v5 }
0x135c   :  { %v2108_v27 = vpop.xlane.xlu0 %2107 }
0x135d   :  { %3193 = vpow2.f32 %v1943_v26  ;;  %v2109_v28 = vsub.f32 %v2105_v13, %v2108_v27  ;;  %v2684_v27 = vld [vmem:[%s3855_s15 + $0x28] sm:$0xff] }
0x135f   :  { %v3190_v29 = vpop.eup %3189  ;;  %v2110_v30 = vmul.f32 1.442695, %v2109_v28 }
0x1360   :  { %v3192_v32 = vpop.eup %3191  ;;  %v1607_v34 = vsel %vm435_vm9, %v3190_v29, 0.0 }
0x1361   :  { %3195 = vpow2.f32 %v2110_v30  ;;  %1608 = vadd.xlane.f32.xlu1 %v1607_v34  ;;  %v1774_v35 = vsel %vm435_vm9, %v3192_v32, 0.0  ;;  %v2686_v30 = vld [vmem:[%s3855_s15 + $0x38] sm:$0xff] }
0x1362   :  { %1775 = vadd.xlane.f32.xlu0 %v1774_v35 }
0x1367   :  { %v3194_v36 = vpop.eup %3193 }
0x1368   :  { %v1945_v37 = vsel %vm435_vm9, %v3194_v36, 0.0 }
0x1369   :  { %1946 = vadd.xlane.f32.xlu1 %v1945_v37 }
0x136b   :  { %v3196_v38 = vpop.eup %3195 }
0x136c   :  { %v2112_v39 = vsel %vm435_vm9, %v3196_v38, 0.0 }
0x136d   :  { %2113 = vadd.xlane.f32.xlu0 %v2112_v39 }
0x137a   :  { %1950 = vrot.lane.b32.xlu1 %v3677_v53, %s3248_s29 }
0x137e   :  { %2117 = vrot.lane.b32.xlu1 %v3677_v53, %s3249_s0 }
0x1383   :  { %1779 = vrot.lane.b32.xlu0 %v3671_v52, %s3249_s0 }
0x13ee   :  { %v1609_v31 = vpop.xlane.xlu1 %1608 }
0x13ef   :  { %3197 = vrcp.f32 %v1609_v31  ;;  %v1776_v40 = vpop.xlane.xlu0 %1775 }
0x13f0   :  { %3199 = vrcp.f32 %v1776_v40  ;;  %v2681_v40 = vld [vmem:[%s3853_s13 + $0x1] ss:$0 sm:$0xff] }
0x13f6   :  { %v1947_v41 = vpop.xlane.xlu1 %1946 }
0x13f7   :  { %3201 = vrcp.f32 %v1947_v41 }
0x13f9   :  { %v3198_v42 = vpop.eup %3197 }
0x13fa   :  { %v1611_v23 = vmul.f32 %v3198_v42, %v3190_v29  ;;  %v2114_v43 = vpop.xlane.xlu0 %2113  ;;  %v3200_v44 = vpop.eup %3199  ;;  %v2685_v29 = vld [vmem:[%s3855_s15 + $0x30] sm:$0xff]  ;;  %v2682_v42 = vld [vmem:[%s3854_s14 + $0x1] ss:$0 sm:$0xff] }
0x13fb   :  { %3203 = vrcp.f32 %v2114_v43  ;;  %v1778_v45 = vmul.f32 %v3200_v44, %v3192_v32  ;;  %v1951_v46 = vpop.permute.xlu1 %1950  ;;  %v3124_v32 = vpack.c.bf16 %v2686_v30, %v2685_v29 }
0x13fc   :  { %2959 = vmatmul.mubr.msk.f32.vlgmr.msra.gmra.mrb[24].mxu1 %vm435_vm9, %v1611_v23 }
0x13fd   :  { %2968 = vmatprep.mubr.msk.f32.mxu1 %vm3244_vm7, %v3243_v20 }
0x13fe   :  { %v1780_v49 = vpop.permute.xlu0 %1779 }
0x13ff   :  { %2967 = vmatpush3.msra.mxu1 %v1780_v49  ;;  %v2118_v52 = vpop.permute.xlu1 %2117 }
0x1400   :  { %2969 = vmatmul.mubr.msk.f32.vlgmr.msra.gmra.mrb[26].mxu1 %vm435_vm9, %v1778_v45  ;;  %2976 = vmatprep.subr.mxu1 %v3243_v20 }
0x1401   :  { %v3202_v50 = vpop.eup %3201  ;;  %2977 = vmatpush3.msra.mxu1 %v1951_v46  ;;  %2978 = vmatprep.mubr.msk.f32.mxu1 %vm3244_vm7, %v3243_v20 }
0x1402   :  { %v1949_v51 = vmul.f32 %v3202_v50, %v3194_v36  ;;  %2986 = vmatprep.subr.mxu1 %v3243_v20  ;;  %v2691_v50 = vld [vmem:[%s3857_s17 + $0x40] sm:$0xff] }
0x1404   :  { %2979 = vmatmul.mubr.msk.f32.vlgmr.msra.gmra.mrb[28].mxu1 %vm435_vm9, %v1949_v51  ;;  %v2692_v51 = vld [vmem:[%s3857_s17 + $0x48] sm:$0xff] }
0x1405   :  { %v3204_v53 = vpop.eup %3203  ;;  %2987 = vmatpush3.msra.mxu1 %v2118_v52  ;;  %2988 = vmatprep.mubr.msk.f32.mxu1 %vm3244_vm7, %v3243_v20  ;;  %v2674_v20 = vld [vmem:[%s3851_s11 + $0x38] sm:$0xff]  ;;  %v3128_v52 = vpack.c.bf16 %v2692_v51, %v2691_v50  ;;  %v2706_v50 = vld [vmem:[%s3860_s20 + $0x1] ss:$0 sm:$0xff] }
0x1406   :  { %v2116_v54 = vmul.f32 %v3204_v53, %v3196_v38  ;;  %v3116_v59 = vpack.c.bf16 %v2674_v20, %v2673_v58  ;;  %v2693_v53 = vld [vmem:[%s3857_s17 + $0x50] sm:$0xff]  ;;  %v3136_v58 = vpack.c.bf16 %v2696_v57, %v2695_v56 }
0x1407   :  { %v2697_v20 = vld [vmem:[%s3857_s17 + $0x70] sm:$0xff] }
0x1408   :  { %2989 = vmatmul.mubr.msk.f32.vlgmr.msra.gmra.mrb[30].mxu1 %vm435_vm9, %v2116_v54  ;;  %3117 = vmatprep.subr.bf16.mxu0 %v3116_v59  ;;  %v2694_v54 = vld [vmem:[%s3857_s17 + $0x58] sm:$0xff] }
0x1409   :  { %3119 = vmatpush3.bf16.msra.mxu0 %v3116_v59  ;;  %v3132_v55 = vpack.c.bf16 %v2694_v54, %v2693_v53  ;;  %v2698_v59 = vld [vmem:[%s3857_s17 + $0x78] sm:$0xff] }
0x140a   :  { %3129 = vmatprep.subr.bf16.mxu0 %v3128_v52 }
0x14cf   :  { %v1684_v60 = vpop.f32.mrb[24].mxu1 }
0x14d0   :  { %v2960_v61 = vpop.f32.mrb[25].mxu1 }
0x14d1   :  { %v2688_v61 = vld [vmem:[%s3880_s5 + $0x1] ss:$0 sm:$0xff] }
0x14d3   :  { %v1851_v62 = vpop.f32.mrb[26].mxu1 }
0x14d4   :  { %1856 = vrot.lane.b32.xlu0 %v1851_v62, %s3250_s4  ;;  %v2970_v63 = vpop.f32.mrb[27].mxu1 }
0x14d7   :  { %v2022_v0 = vpop.f32.mrb[28].mxu1 }
0x14d8   :  { %v2980_v1 = vpop.f32.mrb[29].mxu1 }
0x14db   :  { %v2189_v2 = vpop.f32.mrb[30].mxu1 }
0x14dc   :  { %2194 = vrot.lane.b32.xlu1 %v2189_v2, %s3250_s4  ;;  %v2990_v3 = vpop.f32.mrb[31].mxu1 }
0x1546   :  { %v1857_v4 = vpop.permute.xlu0 %1856 }
0x1547   :  { %v1859_v6 = vsel %vm354_vm8, %v1684_v60, %v1857_v4  ;;  %v3140_v60 = vpack.c.bf16 %v2698_v59, %v2697_v20 }
0x1548   :  { %2999 = vmatprep.mubr.msk.f32.mxu0 %vm212_vm6, %v1859_v6 }
0x154e   :  { %v2195_v7 = vpop.permute.xlu1 %2194 }
0x154f   :  { %v2197_v8 = vsel %vm354_vm8, %v2022_v0, %v2195_v7 }
0x1550   :  { %3000 = vmatmul.mubr.msk.f32.vlgmr.msra.gmra.mrb[12].mxu0 %vm212_vm6, %v2197_v8 }
0x1551   :  { %3131 = vmatpush3.bf16.msra.mxu0 %v3128_v52 }
0x1552   :  { %3133 = vmatprep.subr.bf16.mxu0 %v3132_v55 }
0x1555   :  { %3135 = vmatpush3.bf16.msra.mxu0 %v3132_v55 }
0x1556   :  { %3137 = vmatprep.subr.bf16.mxu0 %v3136_v58 }
0x1559   :  { %3139 = vmatpush3.bf16.msra.mxu0 %v3136_v58 }
0x155a   :  { %3141 = vmatprep.subr.bf16.mxu0 %v3140_v60 }
0x155d   :  { %3143 = vmatpush3.bf16.msra.mxu0 %v3140_v60 }
0x1623   :  { %v3001_v17 = vpop.f32.mrb[12].mxu0 }
0x1624   :  { %v2289_v9 = vadd.f32 %v3001_v17, %v2676_v19  ;;  %v2283_v10 = vpop.f32.mrb[13].mxu0 }
0x1625   :  { %v2284_v11 = vadd.f32 %v2676_v19, %v2283_v10 }
0x1626   :  { %v2293_v12 = vadd.f32 %v2289_v9, %v3660_v48 }
0x1627   :  { %v2292_v13 = vadd.f32 %v2284_v11, %v3658_v47  ;;  %v2683_v47 = vld [vmem:[%s3855_s15 + $0x20] sm:$0xff] }
0x1628   :  { %v2301_v33 = vsel %vm212_vm6, %v2293_v12, 0.0  ;;  %v3120_v28 = vpack.c.bf16 %v2684_v27, %v2683_v47 }
0x1629   :  { %2302 = vadd.xlane.f32.xlu1 %v2301_v33  ;;  %v2298_v14 = vsel %vm212_vm6, %v2292_v13, 0.0 }
0x162a   :  { %2299 = vadd.xlane.f32.xlu0 %v2298_v14  ;;  %3121 = vmatprep.subr.bf16.mxu1 %v3120_v28 }
0x162b   :  { %3123 = vmatpush3.bf16.msra.mxu1 %v3120_v28 }
0x162c   :  { %3125 = vmatprep.subr.bf16.mxu1 %v3124_v32 }
0x162f   :  { %3127 = vmatpush3.bf16.msra.mxu1 %v3124_v32 }
0x16b6   :  { %v2303_v15 = vpop.xlane.xlu1 %2302 }
0x16b7   :  { %v2305_v16 = vmul.f32 0.03125, %v2303_v15  ;;  %v2300_v18 = vpop.xlane.xlu0 %2299 }
0x16b8   :  { %v2304_v21 = vmul.f32 0.03125, %v2300_v18 }
0x16b9   :  { %v2307_v22 = vsub.f32 %v2293_v12, %v2305_v16 }
0x16ba   :  { %v2306_v24 = vsub.f32 %v2292_v13, %v2304_v21  ;;  %v2700_v21 = vld [vmem:[%s3858_s18 + $0x1] ss:$0 sm:$0xff] }
0x16bb   :  { %v2309_v26 = vmul.f32 %v2307_v22, %v2307_v22 }
0x16bc   :  { %v2308_v25 = vmul.f32 %v2306_v24, %v2306_v24 }
0x16bd   :  { %v2313_v48 = vsel %vm212_vm6, %v2309_v26, 0.0 }
0x16be   :  { %v2310_v5 = vsel %vm212_vm6, %v2308_v25, 0.0 }
0x16bf   :  { %2311 = vadd.xlane.f32.xlu0 %v2310_v5 }
0x16c3   :  { %2314 = vadd.xlane.f32.xlu0 %v2313_v48 }
0x174c   :  { %v2312_v34 = vpop.xlane.xlu0 %2311 }
0x174d   :  { %v2316_v35 = vmul.f32 0.03125, %v2312_v34 }
0x174f   :  { %v2318_v36 = vadd.f32 1e-12, %v2316_v35 }
0x1750   :  { %v2315_v37 = vpop.xlane.xlu0 %2314 }
0x1751   :  { %3205 = vrsqrt.f32 %v2318_v36  ;;  %v2317_v38 = vmul.f32 0.03125, %v2315_v37 }
0x1753   :  { %v2319_v39 = vadd.f32 1e-12, %v2317_v38 }
0x1755   :  { %3207 = vrsqrt.f32 %v2319_v39 }
0x175b   :  { %v3206_v31 = vpop.eup %3205 }
0x175c   :  { %v2322_v41 = vmul.f32 %v3206_v31, %v2306_v24 }
0x175e   :  { %v2330_v23 = vmul.f32 %v2681_v40, %v2322_v41 }
0x175f   :  { %v3208_v43 = vpop.eup %3207 }
0x1760   :  { %v2323_v44 = vmul.f32 %v3208_v43, %v2307_v22  ;;  %v2338_v45 = vadd.f32 %v2682_v42, %v2330_v23 }
0x1762   :  { %v2331_v46 = vmul.f32 %v2681_v40, %v2323_v44  ;;  %3010 = vmatprep.mubr.msk.f32.mxu1 %vm212_vm6, %v2338_v45 }
0x1764   :  { %v2339_v49 = vadd.f32 %v2682_v42, %v2331_v46 }
0x1766   :  { %3011 = vmatmul.mubr.msk.f32.vlgmr.msra.gmra.mrb[32].mxu1 %vm212_vm6, %v2339_v49 }
0x1839   :  { %v3012_v62 = vpop.f32.mrb[32].mxu1 }
0x183a   :  { %v2431_v63 = vadd.f32 %v3012_v62, %v2688_v61  ;;  %v2425_v0 = vpop.f32.mrb[33].mxu1 }
0x183b   :  { %v2426_v1 = vadd.f32 %v2688_v61, %v2425_v0 }
0x183c   :  { %v2435_v2 = vmul.f32 %v2431_v63, %v2431_v63 }
0x183d   :  { %v2434_v3 = vmul.f32 %v2426_v1, %v2426_v1 }
0x183e   :  { %v2437_v4 = vmul.f32 %v2435_v2, %v2431_v63 }
0x183f   :  { %v2436_v6 = vmul.f32 %v2434_v3, %v2426_v1 }
0x1840   :  { %v2439_v7 = vmul.f32 0.044715, %v2437_v4 }
0x1841   :  { %v2438_v8 = vmul.f32 0.044715, %v2436_v6 }
0x1842   :  { %v2441_v19 = vadd.f32 %v2439_v7, %v2431_v63 }
0x1843   :  { %v2440_v17 = vadd.f32 %v2438_v8, %v2426_v1 }
0x1844   :  { %v2443_v9 = vmul.f32 0.7978846, %v2441_v19 }
0x1845   :  { %v2442_v10 = vmul.f32 0.7978846, %v2440_v17 }
0x1846   :  { %3209 = vtanh.f32 %v2443_v9 }
0x1847   :  { %3211 = vtanh.f32 %v2442_v10 }
0x1850   :  { %v3210_v11 = vpop.eup %3209 }
0x1851   :  { %v3212_v12 = vpop.eup %3211  ;;  %v2447_v13 = vadd.f32 1.0, %v3210_v11 }
0x1852   :  { %v2446_v33 = vadd.f32 1.0, %v3212_v12 }
0x1853   :  { %v2449_v14 = vmul.f32 0.5, %v2447_v13 }
0x1854   :  { %v2448_v15 = vmul.f32 0.5, %v2446_v33 }
0x1855   :  { %v2451_v18 = vmul.f32 %v2449_v14, %v2431_v63 }
0x1856   :  { %v2450_v16 = vmul.f32 %v2448_v15, %v2426_v1 }
0x1858   :  { %3029 = vmatprep.mubr.msk.f32.mxu0 %vm1300_vm10, %v2450_v16 }
0x1859   :  { %3030 = vmatmul.mubr.msk.f32.vlgmr.msra.gmra.mrb[14].mxu0 %vm1300_vm10, %v2451_v18 }
0x192c   :  { %v3031_v22 = vpop.f32.mrb[14].mxu0 }
0x192d   :  { %v2547_v24 = vadd.f32 %v3031_v22, %v2700_v21  ;;  %v2541_v25 = vpop.f32.mrb[15].mxu0 }
0x192e   :  { %v2542_v5 = vadd.f32 %v2700_v21, %v2541_v25 }
0x192f   :  { %v2551_v26 = vadd.f32 %v2547_v24, %v2339_v49 }
0x1930   :  { %v2550_v48 = vadd.f32 %v2542_v5, %v2338_v45  ;;  %v2705_v45 = vld [vmem:[%s3859_s19 + $0x1] ss:$0 sm:$0xff] }
0x1931   :  { %v2559_v47 = vsel %vm212_vm6, %v2551_v26, 0.0 }
0x1932   :  { %2560 = vadd.xlane.f32.xlu0 %v2559_v47  ;;  %v2556_v27 = vsel %vm212_vm6, %v2550_v48, 0.0 }
0x1933   :  { %2557 = vadd.xlane.f32.xlu1 %v2556_v27 }
0x19bf   :  { %v2561_v28 = vpop.xlane.xlu0 %2560 }
0x19c0   :  { %v2563_v29 = vmul.f32 0.03125, %v2561_v28  ;;  %v2558_v30 = vpop.xlane.xlu1 %2557 }
0x19c1   :  { %v2562_v32 = vmul.f32 0.03125, %v2558_v30 }
0x19c2   :  { %v2565_v34 = vsub.f32 %v2551_v26, %v2563_v29 }
0x19c3   :  { %v2564_v35 = vsub.f32 %v2550_v48, %v2562_v32 }
0x19c4   :  { %v2567_v36 = vmul.f32 %v2565_v34, %v2565_v34 }
0x19c5   :  { %v2566_v37 = vmul.f32 %v2564_v35, %v2564_v35 }
0x19c6   :  { %v2571_v38 = vsel %vm212_vm6, %v2567_v36, 0.0 }
0x19c7   :  { %2572 = vadd.xlane.f32.xlu0 %v2571_v38  ;;  %v2568_v39 = vsel %vm212_vm6, %v2566_v37, 0.0 }
0x19c8   :  { %2569 = vadd.xlane.f32.xlu1 %v2568_v39 }
0x1a54   :  { %v2573_v31 = vpop.xlane.xlu0 %2572 }
0x1a55   :  { %v2575_v40 = vmul.f32 0.03125, %v2573_v31  ;;  %v2570_v41 = vpop.xlane.xlu1 %2569 }
0x1a56   :  { %v2574_v42 = vmul.f32 0.03125, %v2570_v41 }
0x1a57   :  { %v2577_v23 = vadd.f32 1e-12, %v2575_v40 }
0x1a58   :  { %v2576_v43 = vadd.f32 1e-12, %v2574_v42 }
0x1a59   :  { %3213 = vrsqrt.f32 %v2577_v23 }
0x1a5a   :  { %3215 = vrsqrt.f32 %v2576_v43 }
0x1a63   :  { %v3214_v44 = vpop.eup %3213 }
0x1a64   :  { %v3216_v46 = vpop.eup %3215  ;;  %v2581_v49 = vmul.f32 %v3214_v44, %v2565_v34 }
0x1a65   :  { %v2580_v51 = vmul.f32 %v3216_v46, %v2564_v35 }
0x1a66   :  { %v2589_v52 = vmul.f32 %v2705_v45, %v2581_v49 }
0x1a67   :  { %v2588_v53 = vmul.f32 %v2705_v45, %v2580_v51 }
0x1a68   :  { %v2597_v54 = vadd.f32 %v2706_v50, %v2589_v52 }
0x1a69   :  { %v2596_v55 = vadd.f32 %v2706_v50, %v2588_v53 }
0x1a6a   :  { %2600 = vst.msk [vmem:[#allocation2 + $0x1] sm:$0x1] %vm2598_vm11, %v2597_v54 }
0x1a6b   :  { %2599 = vst.msk [vmem:[#allocation2] sm:$0x1] %vm2598_vm11, %v2596_v55 }
0x1a6c   :  { %3228 = shalt.err (!%p3225_p4)
}
0x1a6d   :  { %s3229_s23 = scalar_lea.hbm %s3861_s21, 32 }
0x1a6e   :  { %p3230_p5 = scmp.ne.s32.totalorder %s3861_s21, %s3229_s23  ;;  %p3233_p6 = scmp.lt.u32.totalorder %s3229_s23, %s3861_s21 }
0x1a70   :  { %p3235_p7 = pnand %p3233_p6, %p3230_p5 }
0x1a72   :  { %3238 = shalt.err (!%p3235_p7)
}
0x1a73   :  { %2610 = dma.vmem_to_hbm [thread:$0]  %s2608_s22, 32, %s3861_s21, [#allocation3]  }
0x1a74   :  { %3239 = dma.done.wait [#allocation3], 32  }
0x1a75   :  { %3240 = vsyncadd [#allocation3], 4294967264 }
0x1a76   :  { %2614 = vsyncpa [#allocation3], 1 }

</bundles_post_ra>
